<compile_context>
chip_gen: v5e
topology: v5e:2x2
jax: 0.10.0
libtpu: 0.0.40
codegen_flags: <defaults>
</compile_context>

<pallas_src>
import jax
import jax.numpy as jnp
import numpy as np
from jax.experimental import pallas as pl
from jax.experimental.pallas import tpu as pltpu


def _round_up(x: int, m: int) -> int:
    return ((x + m - 1) // m) * m


# --------------------- lane-packed kernel (128 % action_dim == 0) ----------

def _policy_packed_kernel(x_ref, wbd_ref, b_ref, seg_ref, o_ref):
    # x:   [TBp, P*S]   (P batch rows packed per 128-lane register row)
    # wbd: [P*S, 128]   block-diagonal with P copies of W^T
    # b:   [1, 128]     bias tiled P times
    # seg: [128, 128]   block-diagonal ones -> per-8-lane-group sum broadcast
    logits = jnp.dot(x_ref[...], wbd_ref[...],
                     preferred_element_type=jnp.float32,
                     precision=jax.lax.Precision.HIGHEST) + b_ref[...]
    # Per-packed-row max: the same constant is subtracted from every lane of
    # a group, so the per-group softmax is mathematically unchanged (exact).
    m = jnp.max(logits, axis=-1, keepdims=True)
    e = jnp.exp(logits - m)
    # Group sums, broadcast back to all 8 lanes of the group, via the idle MXU.
    denom = jnp.dot(e, seg_ref[...],
                    preferred_element_type=jnp.float32,
                    precision=jax.lax.Precision.HIGHEST)
    o_ref[...] = (e / denom).astype(o_ref.dtype)   # exact divide, not approx


# --------------------- row-wise fallback kernel ----------------------------

def _policy_rowwise_kernel(x_ref, wt_ref, b_ref, o_ref):
    logits = jnp.dot(x_ref[...], wt_ref[...],
                     preferred_element_type=jnp.float32,
                     precision=jax.lax.Precision.HIGHEST) + b_ref[...]
    m = jnp.max(logits, axis=-1, keepdims=True)
    e = jnp.exp(logits - m)
    o_ref[...] = (e / jnp.sum(e, axis=-1, keepdims=True)).astype(o_ref.dtype)


def _rowwise_forward(state, weight, bias, *, tile_b):
    B, S = state.shape
    A = weight.shape[0]
    f32 = jnp.float32
    wt = weight.T.astype(f32)                       # transposed once on host
    b2 = bias.reshape(1, A).astype(f32)
    TB = B if B <= tile_b else max(8, (tile_b // 8) * 8)
    grid = pl.cdiv(B, TB)                           # ragged last tile masked
    return pl.pallas_call(
        _policy_rowwise_kernel,
        out_shape=jax.ShapeDtypeStruct((B, A), state.dtype),
        grid_spec=pltpu.PrefetchScalarGridSpec(
            num_scalar_prefetch=0,
            grid=(grid,),
            in_specs=[
                pl.BlockSpec((TB, S), lambda i: (i, 0)),
                pl.BlockSpec((S, A), lambda i: (0, 0)),
                pl.BlockSpec((1, A), lambda i: (0, 0)),
            ],
            out_specs=pl.BlockSpec((TB, A), lambda i: (i, 0)),
        ),
        compiler_params=pltpu.CompilerParams(
            dimension_semantics=("parallel",),
            vmem_limit_bytes=32 * 1024 * 1024,
        ),
    )(state.astype(f32), wt, b2)


def simple_policy_forward(state, weight, bias, *, tile_b: int = 16384):
    """softmax(state @ weight.T + bias, axis=-1) as a Pallas TPU kernel."""
    B, S = state.shape
    A = weight.shape[0]
    f32 = jnp.float32

    # Lane packing only when the 128-lane register divides evenly into
    # action groups and the block-diagonal weight stays small.
    packable = (A <= 128) and (128 % A == 0) and ((128 // A) * S * 128 * 4 <= 4 << 20)
    if not packable:
        return _rowwise_forward(state, weight, bias, tile_b=tile_b)

    P = 128 // A                       # batch rows packed per register row
    Bpad = _round_up(B, P)             # pad only to the pack factor (<= P-1 rows)
    xs = state.astype(f32)
    if Bpad != B:
        xs = jnp.pad(xs, ((0, Bpad - B), (0, 0)))
    Bp = Bpad // P
    xp = xs.reshape(Bp, P * S)         # contiguous row-major reshape: free

    # Built once on the host; resident in VMEM across all grid steps.
    wbd = jnp.kron(jnp.eye(P, dtype=f32), weight.T.astype(f32))    # [P*S, 128]
    bt = jnp.tile(bias.astype(f32), P).reshape(1, 128)             # [1, 128]
    seg = jnp.kron(jnp.eye(P, dtype=f32), jnp.ones((A, A), f32))   # [128, 128]

    # Packed-row tile: tile_b=16384 original rows -> 1024 packed rows ->
    # ~2 MiB state tile + 512 KiB lane-dense output tile per buffer.
    TBp = max(8, ((tile_b // P) // 8) * 8)
    if Bp <= TBp:
        TBp = Bp                       # single tile; equals full dim (legal)
    grid = pl.cdiv(Bp, TBp)            # ragged last tile handled by masking

    out_p = pl.pallas_call(
        _policy_packed_kernel,
        out_shape=jax.ShapeDtypeStruct((Bp, 128), state.dtype),
        grid_spec=pltpu.PrefetchScalarGridSpec(
            num_scalar_prefetch=0,
            grid=(grid,),
            in_specs=[
                pl.BlockSpec((TBp, P * S), lambda i: (i, 0)),    # packed state
                pl.BlockSpec((P * S, 128), lambda i: (0, 0)),    # block-diag W^T
                pl.BlockSpec((1, 128), lambda i: (0, 0)),        # tiled bias
                pl.BlockSpec((128, 128), lambda i: (0, 0)),      # group-sum ones
            ],
            out_specs=pl.BlockSpec((TBp, 128), lambda i: (i, 0)),
        ),
        compiler_params=pltpu.CompilerParams(
            # Independent batch tiles -> sharded across TCs on v7x megacore.
            dimension_semantics=("parallel",),
            vmem_limit_bytes=32 * 1024 * 1024,
        ),
    )(xp, wbd, bt, seg)

    probs = out_p.reshape(Bpad, A)     # zero-copy view of the packed output
    return probs[:B] if Bpad != B else probs


if __name__ == "__main__":
    # Small shapes consistent with SimplePolicy(state_dim, action_dim)
    B, state_dim, action_dim = 8, 32, 8

    key = jax.random.PRNGKey(0)
    k_x, k_w, k_b = jax.random.split(key, 3)

    # Deterministic init (mimics PyTorch Linear's U(-1/sqrt(in), 1/sqrt(in)))
    bound = float(1.0 / np.sqrt(np.float32(state_dim)))
    weight = jax.random.uniform(
        k_w, (action_dim, state_dim), jnp.float32, minval=-bound, maxval=bound
    )
    bias = jax.random.uniform(
        k_b, (action_dim,), jnp.float32, minval=-bound, maxval=bound
    )
    state = jax.random.normal(k_x, (B, state_dim), jnp.float32)

    out = simple_policy_forward(state, weight, bias)
    out = jax.block_until_ready(out)

    # Exact float64 numpy reference (avoids TPU default-matmul-precision noise).
    s64 = np.asarray(state, np.float64)
    w64 = np.asarray(weight, np.float64)
    b64 = np.asarray(bias, np.float64)
    logits = s64 @ w64.T + b64
    z = np.exp(logits - logits.max(axis=-1, keepdims=True))
    ref = z / z.sum(axis=-1, keepdims=True)

    out_np = np.asarray(out, np.float64)
    assert out.shape == (B, action_dim)
    assert np.allclose(out_np, ref, atol=1e-4, rtol=1e-4)
    assert np.allclose(out_np.sum(axis=-1), 1.0, atol=1e-4)

    print("KERNEL_OK")
</pallas_src>

<mosaic_0001>
module attributes {stable_mosaic.version = 11 : i64} {
  func.func @_policy_packed_kernel(%arg0: i32, %arg1: memref<1x512xf32, #tpu.memory_space<vmem>>, %arg2: memref<512x128xf32, #tpu.memory_space<vmem>>, %arg3: memref<1x128xf32, #tpu.memory_space<vmem>>, %arg4: memref<128x128xf32, #tpu.memory_space<vmem>>, %arg5: memref<1x128xf32, #tpu.memory_space<vmem>>) attributes {dimension_semantics = [#tpu.dimension_semantics<parallel>], iteration_bounds = array<i64: 1>, scalar_prefetch = 0 : i64, scratch_operands = 0 : i64, tpu.core_type = #tpu.core_type<tc>, window_params = [{transform_indices = @transform_0, window_bounds = array<i64: 1, 512>}, {pipeline_mode = #tpu.pipeline_mode<synchronous>, transform_indices = @transform_1, window_bounds = array<i64: 512, 128>}, {pipeline_mode = #tpu.pipeline_mode<synchronous>, transform_indices = @transform_2, window_bounds = array<i64: 1, 128>}, {pipeline_mode = #tpu.pipeline_mode<synchronous>, transform_indices = @transform_3, window_bounds = array<i64: 128, 128>}, {transform_indices = @transform_4, window_bounds = array<i64: 1, 128>}]} {
    %c0 = arith.constant 0 : index
    %c0_0 = arith.constant 0 : index
    %0 = vector.load %arg1[%c0, %c0_0] : memref<1x512xf32, #tpu.memory_space<vmem>>, vector<1x512xf32>
    %c0_1 = arith.constant 0 : index
    %c0_2 = arith.constant 0 : index
    %1 = vector.load %arg2[%c0_1, %c0_2] : memref<512x128xf32, #tpu.memory_space<vmem>>, vector<512x128xf32>
    %cst = arith.constant dense<0.000000e+00> : vector<1x128xf32>
    %2 = tpu.matmul %0, %1, %cst {dimension_numbers = #tpu.dot_dimension_numbers<[1], [0], [0], [1], [0, 0, 1, 1], [], []>, precision = #tpu.contract_precision<fp32>} : vector<1x512xf32>, vector<512x128xf32>, vector<1x128xf32> -> vector<1x128xf32>
    %c0_3 = arith.constant 0 : index
    %c0_4 = arith.constant 0 : index
    %3 = vector.load %arg3[%c0_3, %c0_4] : memref<1x128xf32, #tpu.memory_space<vmem>>, vector<1x128xf32>
    %4 = arith.addf %2, %3 : vector<1x128xf32>
    %cst_5 = arith.constant dense<0xFF800000> : vector<1xf32>
    %5 = vector.multi_reduction <maximumf>, %4, %cst_5 [1] : vector<1x128xf32> to vector<1xf32>
    %6 = vector.shape_cast %5 : vector<1xf32> to vector<1x1xf32>
    %7 = vector.broadcast %6 : vector<1x1xf32> to vector<1x128xf32>
    %8 = arith.subf %4, %7 : vector<1x128xf32>
    %9 = math.exp %8 : vector<1x128xf32>
    %c0_6 = arith.constant 0 : index
    %c0_7 = arith.constant 0 : index
    %10 = vector.load %arg4[%c0_6, %c0_7] : memref<128x128xf32, #tpu.memory_space<vmem>>, vector<128x128xf32>
    %cst_8 = arith.constant dense<0.000000e+00> : vector<1x128xf32>
    %11 = tpu.matmul %9, %10, %cst_8 {dimension_numbers = #tpu.dot_dimension_numbers<[1], [0], [0], [1], [0, 0, 1, 1], [], []>, precision = #tpu.contract_precision<fp32>} : vector<1x128xf32>, vector<128x128xf32>, vector<1x128xf32> -> vector<1x128xf32>
    %12 = arith.divf %9, %11 : vector<1x128xf32>
    %c0_9 = arith.constant 0 : index
    %c0_10 = arith.constant 0 : index
    %13 = vector.load %arg5[%c0_9, %c0_10] : memref<1x128xf32, #tpu.memory_space<vmem>>, vector<1x128xf32>
    tpu.vector_store %arg5[%c0_9, %c0_10], %12 {strides = array<i32>} : memref<1x128xf32, #tpu.memory_space<vmem>>, vector<1x128xf32>,
    return
  }
  func.func @transform_0(%arg0: i32) -> (i32, i32) {
    %c0_i32 = arith.constant 0 : i32
    %c0_i32_0 = arith.constant 0 : i32
    return %arg0, %c0_i32 : i32, i32
  }
  func.func @transform_1(%arg0: i32) -> (i32, i32) {
    %c0_i32 = arith.constant 0 : i32
    %c0_i32_0 = arith.constant 0 : i32
    %c0_i32_1 = arith.constant 0 : i32
    return %c0_i32, %c0_i32_0 : i32, i32
  }
  func.func @transform_2(%arg0: i32) -> (i32, i32) {
    %c0_i32 = arith.constant 0 : i32
    %c0_i32_0 = arith.constant 0 : i32
    %c0_i32_1 = arith.constant 0 : i32
    return %c0_i32, %c0_i32_0 : i32, i32
  }
  func.func @transform_3(%arg0: i32) -> (i32, i32) {
    %c0_i32 = arith.constant 0 : i32
    %c0_i32_0 = arith.constant 0 : i32
    %c0_i32_1 = arith.constant 0 : i32
    return %c0_i32, %c0_i32_0 : i32, i32
  }
  func.func @transform_4(%arg0: i32) -> (i32, i32) {
    %c0_i32 = arith.constant 0 : i32
    %c0_i32_0 = arith.constant 0 : i32
    return %arg0, %c0_i32 : i32, i32
  }
}

</mosaic_0001>

<bundles_post_ra>
// kernel: tpu_custom_call.1
= control target key start
LH: loop header
LB: loop body
LE: loop exit
PB: predicated region body
PF: predicated region fallthrough
CT: control target
= control target key end

     0   :  { %9 = vsyncpa [#allocation3], 0  ;;  %s3316_s0 = inlined_call_operand.hbm [shape: f32[1,512], index: 0, kind: input, shape index: {}]   ;;  %s3317_s1 = inlined_call_operand.hbm [shape: f32[512,128], index: 1, kind: input, shape index: {}]   ;;  %s3318_s2 = inlined_call_operand.vmem [shape: f32[1,128], index: 2, kind: input, shape index: {}]   ;;  %s3319_s3 = inlined_call_operand.hbm [shape: f32[128,128], index: 3, kind: input, shape index: {}]   ;;  %s3320_s4 = inlined_call_operand.hbm [shape: f32[1,128], index: 4, kind: output, shape index: {}]  }
   0x1   :  { %10 = vsyncpa [#allocation6], 0  ;;  %s27_s17 = sshll.u32 %s3317_s1, 4  ;;  %s28_s17 = int_to_ptr.hbm [resolvable:$true] %s27_s17 }
   0x2   :  { %11 = vsyncpa [#allocation4], 0  ;;  %s2012_s18 = smov [#allocation5]   ;;  %s17_s22 = sshll.u32 %s3316_s0, 4  ;;  %s18_s22 = int_to_ptr.hbm [resolvable:$true] %s17_s22 }
   0x3   :  { %s29_s19 = sshll.u32 %s2012_s18, 4  ;;  %s2013_s23 = smov 128   ;;  %s30_s19 = int_to_ptr.vmem [resolvable:$true] %s29_s19 }
   0x4   :  { %s2014_s24 = smov 8   ;;  %s2015_s25 = smov [#allocation2]  }
   0x5   :  { %35 = dma.hbm_to_vmem [thread:$0]  %s28_s17, 8192, %s30_s19, [#allocation6], %s2013_s23, %s2013_s23, %s2014_s24  }
   0x6   :  { %s19_s26 = sshll.u32 %s2015_s25, 4  ;;  %s42_s29 = sshll.u32 %s3319_s3, 4  ;;  %s20_s26 = int_to_ptr.vmem [resolvable:$true] %s19_s26  ;;  %s43_s29 = int_to_ptr.hbm [resolvable:$true] %s42_s29 }
   0x7   :  { %22 = dma.hbm_to_vmem [thread:$0]  %s18_s22, 64, %s20_s26, [#allocation3]  }
   0x8   :  { %s2016_s1 = smov [#allocation7]  }
   0x9   :  { %s44_s30 = sshll.u32 %s2016_s1, 4  ;;  %s45_s30 = int_to_ptr.vmem [resolvable:$true] %s44_s30 }
   0xa   :  { %50 = dma.hbm_to_vmem [thread:$0]  %s43_s29, 2048, %s45_s30, [#allocation6], %s2013_s23, %s2013_s23, %s2014_s24  }
   0xb   :  { %2006 = dma.done.wait [#allocation3], 64  }
   0xc   :  { %2007 = vsyncadd [#allocation3], 4294967232 }
   0xd   :  { %2008 = dma.done.wait [#allocation6], 10240  }
   0xe   :  { %2009 = vsyncadd [#allocation6], 4294957056  ;;  %v79_v0 = vld [vmem:[#allocation5 + $0x78] sm:$0xff]  ;;  %v78_v1 = vld [vmem:[#allocation5 + $0x70] sm:$0xff]  ;;  %vm1502_vm0 = vcmask 1040384   ;;  %s1889_s8 = sshll.u32 %s3320_s4, 4  ;;  %s1890_s8 = int_to_ptr.hbm [resolvable:$true] %s1889_s8 }
   0xf   :  { %v77_v2 = vld [vmem:[#allocation5 + $0x68] sm:$0xff]  ;;  %v2052_v3 = vand.u32 4294901760, %v79_v0  ;;  %v2054_v4 = vand.u32 4294901760, %v78_v1  ;;  %v76_v6 = vld [vmem:[#allocation5 + $0x60] sm:$0xff]  ;;  %v75_v7 = vld [vmem:[#allocation5 + $0x58] sm:$0xff] }
  0x10   :  { %v2056_v5 = vand.u32 4294901760, %v77_v2  ;;  %v74_v8 = vld [vmem:[#allocation5 + $0x50] sm:$0xff]  ;;  %v2058_v9 = vand.u32 4294901760, %v76_v6  ;;  %v2060_v10 = vand.u32 4294901760, %v75_v7  ;;  %v73_v12 = vld [vmem:[#allocation5 + $0x48] sm:$0xff]  ;;  %v72_v13 = vld [vmem:[#allocation5 + $0x40] sm:$0xff] }
  0x11   :  { %v2062_v11 = vand.u32 4294901760, %v74_v8  ;;  %139 = vmatpush.msra.mxu0 %v2052_v3  ;;  %v2066_v14 = vsub.f32 %v79_v0, %v2052_v3  ;;  %v2069_v15 = vsub.f32 %v78_v1, %v2054_v4  ;;  %335 = vmatpush.msra.mxu3 %v2052_v3  ;;  %v2075_v17 = vand.u32 4294901760, %v73_v12  ;;  %v71_v21 = vld [vmem:[#allocation5 + $0x38] sm:$0xff]  ;;  %v70_v26 = vld [vmem:[#allocation5 + $0x30] sm:$0xff]  ;;  %v69_v36 = vld [vmem:[#allocation5 + $0x28] sm:$0xff] }
  0x12   :  { %v2073_v16 = vsub.f32 %v77_v2, %v2056_v5  ;;  %v2078_v18 = vsub.f32 %v76_v6, %v2058_v9  ;;  %v2081_v19 = vsub.f32 %v75_v7, %v2060_v10  ;;  %v2083_v20 = vand.u32 4294901760, %v72_v13  ;;  %v68_v42 = vld [vmem:[#allocation5 + $0x20] sm:$0xff]  ;;  %v67_v48 = vld [vmem:[#allocation5 + $0x18] sm:$0xff]  ;;  %v66_v54 = vld [vmem:[#allocation5 + $0x10] sm:$0xff] }
  0x13   :  { %141 = vmatpush.msra.mxu0 %v2054_v4  ;;  %282 = vmatpush.msra.mxu2 %v2066_v14  ;;  %v181_v22 = vand.u32 4294901760, %v2066_v14  ;;  %v3336_v23 = vand.u32 4294901760, %v2069_v15  ;;  %v2091_v25 = vsub.f32 %v74_v8, %v2062_v11  ;;  %v2097_v29 = vsub.f32 %v73_v12, %v2075_v17  ;;  %v65_v59 = vld [vmem:[#allocation5 + $0x8] sm:$0xff]  ;;  %v95_v60 = vld [vmem:[#allocation5 + $0xf8] sm:$0xff]  ;;  %v94_v2 = vld [vmem:[#allocation5 + $0xf0] sm:$0xff] }
  0x14   :  { %v3334_v24 = vand.u32 4294901760, %v2073_v16  ;;  %337 = vmatpush.msra.mxu3 %v2054_v4  ;;  %v3333_v27 = vand.u32 4294901760, %v2078_v18  ;;  %v3330_v28 = vand.u32 4294901760, %v2081_v19  ;;  %v2110_v33 = vand.u32 4294901760, %v71_v21  ;;  %v64_v7 = vld [vmem:[#allocation5] sm:$0xff] }
  0x15   :  { %143 = vmatpush.msra.mxu0 %v2056_v5  ;;  %285 = vmatpush.msra.mxu2 %v2069_v15  ;;  %v182_v30 = vsub.f32 %v2066_v14, %v181_v22  ;;  %v188_v31 = vsub.f32 %v2069_v15, %v3336_v23  ;;  %v2113_v34 = vand.u32 4294901760, %v70_v26  ;;  %v2116_v35 = vsub.f32 %v72_v13, %v2083_v20  ;;  %v86_v23 = vld [vmem:[#allocation5 + $0xb0] sm:$0xff]  ;;  %v85_v14 = vld [vmem:[#allocation5 + $0xa8] sm:$0xff] }
  0x16   :  { %v194_v32 = vsub.f32 %v2073_v16, %v3334_v24  ;;  %339 = vmatpush.msra.mxu3 %v2056_v5  ;;  %v200_v39 = vsub.f32 %v2078_v18, %v3333_v27  ;;  %v3329_v40 = vand.u32 4294901760, %v2091_v25  ;;  %v206_v41 = vsub.f32 %v2081_v19, %v3330_v28 }
  0x17   :  { %145 = vmatpush.msra.mxu0 %v2058_v9  ;;  %v183_v37 = vand.u32 4294901760, %v182_v30  ;;  %288 = vmatpush.msra.mxu2 %v2073_v16  ;;  %v189_v38 = vand.u32 4294901760, %v188_v31  ;;  %v2129_v44 = vand.u32 4294901760, %v69_v36  ;;  %v3327_v45 = vand.u32 4294901760, %v2097_v29 }
  0x18   :  { %341 = vmatpush.msra.mxu3 %v2058_v9  ;;  %v195_v43 = vand.u32 4294901760, %v194_v32  ;;  %v2133_v46 = vsub.f32 %v71_v21, %v2110_v33  ;;  %v3326_v47 = vand.u32 4294901760, %v2116_v35  ;;  %v201_v49 = vand.u32 4294901760, %v200_v39  ;;  %v93_v32 = vld [vmem:[#allocation5 + $0xe8] sm:$0xff] }
  0x19   :  { %147 = vmatpush.msra.mxu0 %v2060_v10  ;;  %184 = vmatpush.msra.mxu1 %v183_v37  ;;  %v212_v50 = vsub.f32 %v2091_v25, %v3329_v40  ;;  %v2142_v51 = vand.u32 4294901760, %v68_v42  ;;  %v2145_v52 = vsub.f32 %v70_v26, %v2113_v34  ;;  %v207_v53 = vand.u32 4294901760, %v206_v41  ;;  %v92_v41 = vld [vmem:[#allocation5 + $0xe0] sm:$0xff] }
  0x1a   :  { %291 = vmatpush.msra.mxu2 %v2078_v18  ;;  %343 = vmatpush.msra.mxu3 %v2060_v10  ;;  %v218_v55 = vsub.f32 %v2097_v29, %v3327_v45  ;;  %v2153_v56 = vand.u32 4294901760, %v67_v48  ;;  %v3324_v57 = vand.u32 4294901760, %v2133_v46  ;;  %v2157_v58 = vsub.f32 %v69_v36, %v2129_v44  ;;  %v88_v45 = vld [vmem:[#allocation5 + $0xc0] sm:$0xff] }
  0x1b   :  { %149 = vmatpush.msra.mxu0 %v2062_v11  ;;  %190 = vmatpush.msra.mxu1 %v189_v38  ;;  %v224_v61 = vsub.f32 %v2116_v35, %v3326_v47  ;;  %v213_v62 = vand.u32 4294901760, %v212_v50  ;;  %v2165_v63 = vand.u32 4294901760, %v66_v54  ;;  %v3323_v0 = vand.u32 4294901760, %v2145_v52 }
  0x1c   :  { %294 = vmatpush.msra.mxu2 %v2081_v19  ;;  %345 = vmatpush.msra.mxu3 %v2062_v11  ;;  %v2169_v1 = vsub.f32 %v68_v42, %v2142_v51  ;;  %v2173_v6 = vand.u32 4294901760, %v65_v59  ;;  %v2175_v8 = vand.u32 4294901760, %v95_v60  ;;  %v219_v12 = vand.u32 4294901760, %v218_v55 }
  0x1d   :  { %151 = vmatpush.msra.mxu0 %v2075_v17  ;;  %196 = vmatpush.msra.mxu1 %v195_v43  ;;  %v230_v13 = vsub.f32 %v2133_v46, %v3324_v57  ;;  %v3321_v21 = vand.u32 4294901760, %v2157_v58  ;;  %v2183_v26 = vsub.f32 %v67_v48, %v2153_v56  ;;  %v225_v30 = vand.u32 4294901760, %v224_v61 }
  0x1e   :  { %297 = vmatpush.msra.mxu2 %v2091_v25  ;;  %347 = vmatpush.msra.mxu3 %v2075_v17  ;;  %3360 = vst [vmem:[#allocation12_spill] sm:$0xff] %v2173_v6  ;;  %v2187_v31 = vand.u32 4294901760, %v94_v2  ;;  %v236_v36 = vsub.f32 %v2145_v52, %v3323_v0  ;;  %v2193_v37 = vand.u32 4294901760, %v64_v7  ;;  %v3322_v38 = vand.u32 4294901760, %v2169_v1 }
  0x1f   :  { %153 = vmatpush.msra.mxu0 %v2083_v20  ;;  %202 = vmatpush.msra.mxu1 %v201_v49  ;;  %v2197_v39 = vsub.f32 %v66_v54, %v2165_v63  ;;  %v2202_v42 = vsub.f32 %v65_v59, %v2173_v6  ;;  %v2205_v43 = vsub.f32 %v95_v60, %v2175_v8  ;;  %v231_v48 = vand.u32 4294901760, %v230_v13  ;;  %v91_v59 = vld [vmem:[#allocation5 + $0xd8] sm:$0xff] }
  0x20   :  { %300 = vmatpush.msra.mxu2 %v2097_v29  ;;  %349 = vmatpush.msra.mxu3 %v2083_v20  ;;  %3361 = vst [vmem:[#allocation13_spill] sm:$0xff] %v2193_v37  ;;  %v242_v49 = vsub.f32 %v2157_v58, %v3321_v21  ;;  %v3325_v50 = vand.u32 4294901760, %v2183_v26  ;;  %v2217_v54 = vsub.f32 %v94_v2, %v2187_v31  ;;  %v2219_v55 = vand.u32 4294901760, %v92_v41  ;;  %v90_v21 = vld [vmem:[#allocation5 + $0xd0] sm:$0xff] }
  0x21   :  { %155 = vmatpush.msra.mxu0 %v2110_v33  ;;  %208 = vmatpush.msra.mxu1 %v207_v53  ;;  %v2212_v53 = vand.u32 4294901760, %v93_v32  ;;  %v237_v60 = vand.u32 4294901760, %v236_v36  ;;  %v248_v61 = vsub.f32 %v2169_v1, %v3322_v38  ;;  %v3331_v2 = vand.u32 4294901760, %v2202_v42 }
  0x22   :  { %303 = vmatpush.msra.mxu2 %v2116_v35  ;;  %351 = vmatpush.msra.mxu3 %v2110_v33  ;;  %v3332_v13 = vand.u32 4294901760, %v2205_v43  ;;  %v254_v36 = vsub.f32 %v2183_v26, %v3325_v50  ;;  %v2240_v38 = vand.u32 4294901760, %v91_v59  ;;  %v3335_v0 = vand.u32 4294901760, %v2217_v54 }
  0x23   :  { %157 = vmatpush.msra.mxu0 %v2113_v34  ;;  %214 = vmatpush.msra.mxu1 %v213_v62  ;;  %v3328_v62 = vand.u32 4294901760, %v2197_v39  ;;  %v2246_v57 = vsub.f32 %v92_v41, %v2219_v55  ;;  %v2253_v47 = vand.u32 4294901760, %v90_v21  ;;  %v266_v41 = vsub.f32 %v2202_v42, %v3331_v2 }
  0x24   :  { %306 = vmatpush.msra.mxu2 %v2133_v46  ;;  %353 = vmatpush.msra.mxu3 %v2113_v34  ;;  %v2266_v40 = vsub.f32 %v91_v59, %v2240_v38  ;;  %v529_v2 = vsub.f32 %v2217_v54, %v3335_v0  ;;  %v2276_v27 = vand.u32 4294901760, %v88_v45 }
  0x25   :  { %159 = vmatpush.msra.mxu0 %v2129_v44  ;;  %220 = vmatpush.msra.mxu1 %v219_v12  ;;  %v2227_v12 = vsub.f32 %v64_v7, %v2193_v37  ;;  %v2238_v7 = vsub.f32 %v93_v32, %v2212_v53  ;;  %v260_v32 = vsub.f32 %v2197_v39, %v3328_v62  ;;  %v267_v0 = vand.u32 4294901760, %v266_v41 }
  0x26   :  { %309 = vmatpush.msra.mxu2 %v2145_v52  ;;  %355 = vmatpush.msra.mxu3 %v2129_v44  ;;  %v2283_v24 = vsub.f32 %v90_v21, %v2253_v47  ;;  %v530_v41 = vand.u32 4294901760, %v529_v2  ;;  %v2313_v2 = vand.u32 4294901760, %v85_v14 }
  0x27   :  { %161 = vmatpush.msra.mxu0 %v2142_v51  ;;  %226 = vmatpush.msra.mxu1 %v225_v30  ;;  %v243_v30 = vand.u32 4294901760, %v242_v49  ;;  %v249_v49 = vand.u32 4294901760, %v248_v61  ;;  %v3337_v50 = vand.u32 4294901760, %v2227_v12  ;;  %v255_v61 = vand.u32 4294901760, %v254_v36 }
  0x28   :  { %312 = vmatpush.msra.mxu2 %v2157_v58  ;;  %357 = vmatpush.msra.mxu3 %v2142_v51  ;;  %v3338_v62 = vand.u32 4294901760, %v2238_v7  ;;  %v261_v59 = vand.u32 4294901760, %v260_v32 }
  0x29   :  { %163 = vmatpush.msra.mxu0 %v2153_v56  ;;  %232 = vmatpush.msra.mxu1 %v231_v48  ;;  %v89_v48 = vld [vmem:[#allocation5 + $0xc8] sm:$0xff]  ;;  %v272_v36 = vsub.f32 %v2227_v12, %v3337_v50 }
  0x2a   :  { %315 = vmatpush.msra.mxu2 %v2169_v1  ;;  %359 = vmatpush.msra.mxu3 %v2153_v56  ;;  %v2268_v28 = vand.u32 4294901760, %v89_v48 }
  0x2b   :  { %165 = vmatpush.msra.mxu0 %v2165_v63  ;;  %238 = vmatpush.msra.mxu1 %v237_v60  ;;  %v523_v60 = vsub.f32 %v2205_v43, %v3332_v13 }
  0x2c   :  { %318 = vmatpush.msra.mxu2 %v2183_v26  ;;  %361 = vmatpush.msra.mxu3 %v2165_v63  ;;  %v2294_v21 = vsub.f32 %v89_v48, %v2268_v28  ;;  %v273_v48 = vand.u32 4294901760, %v272_v36 }
  0x2d   :  { %167 = vmatpush.msra.mxu0 %v2173_v6  ;;  %244 = vmatpush.msra.mxu1 %v243_v30  ;;  %v87_v30 = vld [vmem:[#allocation5 + $0xb8] sm:$0xff]  ;;  %v524_v13 = vand.u32 4294901760, %v523_v60  ;;  %v3363_v60 = vand.u32 4294901760, %v2246_v57 }
  0x2e   :  { %321 = vmatpush.msra.mxu2 %v2197_v39  ;;  %363 = vmatpush.msra.mxu3 %v2173_v6  ;;  %v2296_v50 = vand.u32 4294901760, %v87_v30  ;;  %v2315_v6 = vld [vmem:[#allocation2] sm:$0xf] }
  0x2f   :  { %169 = vmatpush.msra.mxu0 %v2193_v37  ;;  %250 = vmatpush.msra.mxu1 %v249_v49  ;;  %v535_v49 = vsub.f32 %v2238_v7, %v3338_v62  ;;  %v2305_v62 = vsub.f32 %v88_v45, %v2276_v27 }
  0x30   :  { %324 = vmatpush.msra.mxu2 %v2202_v42  ;;  %365 = vmatpush.msra.mxu3 %v2193_v37  ;;  %v2309_v37 = vand.u32 4294901760, %v86_v23  ;;  %v2323_v32 = vsub.f32 %v87_v30, %v2296_v50 }
  0x31   :  { %376 = vmatpush.msrb.mxu0 %v181_v22  ;;  %256 = vmatpush.msra.mxu1 %v255_v61  ;;  %v3362_v22 = vand.u32 4294901760, %v2069_v15  ;;  %v541_v61 = vsub.f32 %v2246_v57, %v3363_v60  ;;  %v3364_v15 = vand.u32 4294901760, %v2073_v16  ;;  %v536_v45 = vand.u32 4294901760, %v535_v49 }
  0x32   :  { %327 = vmatpush.msra.mxu2 %v2227_v12  ;;  %525 = vmatpush.msrb.mxu3 %v524_v13  ;;  %v3366_v16 = vand.u32 4294901760, %v2078_v18  ;;  %v3367_v49 = vand.u32 4294901760, %v2283_v24  ;;  %v2333_v60 = vsub.f32 %v86_v23, %v2309_v37  ;;  %v130_v18 = vperm.slane %v2315_v6, 0 }
  0x33   :  { %380 = vmatpush.msrb.mxu0 %v3362_v22  ;;  %262 = vmatpush.msra.mxu1 %v261_v59  ;;  %v84_v22 = vld [vmem:[#allocation5 + $0xa0] sm:$0xff]  ;;  %v3365_v59 = vand.u32 4294901760, %v2266_v40  ;;  %v542_v13 = vand.u32 4294901760, %v541_v61  ;;  %v2342_v61 = vsub.f32 %v85_v14, %v2313_v2 }
  0x34   :  { %480 = vmatpush.msrb.mxu2 %v2175_v8  ;;  %531 = vmatpush.msrb.mxu3 %v530_v41  ;;  %v2335_v30 = vand.u32 4294901760, %v84_v22  ;;  %v3368_v41 = vand.u32 4294901760, %v2081_v19  ;;  %v3370_v19 = vand.u32 4294901760, %v2091_v25  ;;  %v3372_v25 = vand.u32 4294901760, %v2097_v29 }
  0x35   :  { %384 = vmatpush.msrb.mxu0 %v3364_v15  ;;  %268 = vmatpush.msra.mxu1 %v267_v0  ;;  %v547_v36 = vsub.f32 %v2266_v40, %v3365_v59  ;;  %v83_v0 = vld [vmem:[#allocation5 + $0x98] sm:$0xff]  ;;  %v553_v59 = vsub.f32 %v2283_v24, %v3367_v49  ;;  %v2362_v49 = vand.u32 4294901760, %v130_v18  ;;  %v3374_v29 = vand.u32 4294901760, %v2116_v35 }
  0x36   :  { %482 = vmatpush.msrb.mxu2 %v2187_v31  ;;  %537 = vmatpush.msrb.mxu3 %v536_v45  ;;  %v2349_v15 = vand.u32 4294901760, %v83_v0  ;;  %v3376_v35 = vand.u32 4294901760, %v2133_v46  ;;  %v3378_v46 = vand.u32 4294901760, %v2145_v52 }
  0x37   :  { %388 = vmatpush.msrb.mxu0 %v3366_v16  ;;  %274 = vmatpush.msra.mxu1 %v273_v48  ;;  %v548_v48 = vand.u32 4294901760, %v547_v36  ;;  %v3369_v16 = vand.u32 4294901760, %v2294_v21  ;;  %v554_v45 = vand.u32 4294901760, %v553_v59  ;;  %v3373_v59 = vand.u32 4294901760, %v2323_v32 }
  0x38   :  { %484 = vmatpush.msrb.mxu2 %v2212_v53  ;;  %543 = vmatpush.msrb.mxu3 %v542_v13  ;;  %v2375_v36 = vsub.f32 %v83_v0, %v2349_v15 }
  0x39   :  { %392 = vmatpush.msrb.mxu0 %v3368_v41  ;;  %443 = vmatpush.msrb.mxu1 %v2052_v3  ;;  %v559_v23 = vsub.f32 %v2294_v21, %v3369_v16  ;;  %v3371_v3 = vand.u32 4294901760, %v2305_v62  ;;  %v82_v41 = vld [vmem:[#allocation5 + $0x90] sm:$0xff]  ;;  %v2360_v16 = vsub.f32 %v84_v22, %v2335_v30 }
  0x3a   :  { %486 = vmatpush.msrb.mxu2 %v2219_v55  ;;  %549 = vmatpush.msrb.mxu3 %v548_v48  ;;  %v2372_v22 = vand.u32 4294901760, %v82_v41  ;;  %v3375_v48 = vand.u32 4294901760, %v2333_v60 }
  0x3b   :  { %396 = vmatpush.msrb.mxu0 %v3370_v19  ;;  %445 = vmatpush.msrb.mxu1 %v2054_v4  ;;  %v565_v14 = vsub.f32 %v2305_v62, %v3371_v3  ;;  %v81_v19 = vld [vmem:[#allocation5 + $0x88] sm:$0xff]  ;;  %v560_v13 = vand.u32 4294901760, %v559_v23  ;;  %v571_v3 = vsub.f32 %v2323_v32, %v3373_v59  ;;  %v588_v59 = vand.u32 4294901760, %v2360_v16 }
  0x3c   :  { %488 = vmatpush.msrb.mxu2 %v2240_v38  ;;  %555 = vmatpush.msrb.mxu3 %v554_v45  ;;  %v577_v23 = vsub.f32 %v2333_v60, %v3375_v48  ;;  %v2386_v4 = vsub.f32 %v130_v18, %v2362_v49  ;;  %v2388_v0 = vand.u32 4294901760, %v81_v19  ;;  %v2399_v18 = vsub.f32 %v82_v41, %v2372_v22 }
  0x3d   :  { %400 = vmatpush.msrb.mxu0 %v3372_v25  ;;  %447 = vmatpush.msrb.mxu1 %v2056_v5  ;;  %v566_v5 = vand.u32 4294901760, %v565_v14  ;;  %v80_v25 = vld [vmem:[#allocation5 + $0x80] sm:$0xff]  ;;  %v572_v45 = vand.u32 4294901760, %v571_v3 }
  0x3e   :  { %490 = vmatpush.msrb.mxu2 %v2253_v47  ;;  %561 = vmatpush.msrb.mxu3 %v560_v13  ;;  %v2401_v48 = vand.u32 4294901760, %v80_v25  ;;  %v589_v13 = vsub.f32 %v2360_v16, %v588_v59  ;;  %v172_v3 = vand.u32 4294901760, %v2386_v4  ;;  %v2412_v41 = vsub.f32 %v81_v19, %v2388_v0 }
  0x3f   :  { %404 = vmatpush.msrb.mxu0 %v3374_v29  ;;  %449 = vmatpush.msrb.mxu1 %v2058_v9  ;;  %v3377_v9 = vand.u32 4294901760, %v2342_v61  ;;  %v594_v29 = vand.u32 4294901760, %v2375_v36  ;;  %v131_v19 = vperm.slane %v2315_v6, 1 }
  0x40   :  { %492 = vmatpush.msrb.mxu2 %v2268_v28  ;;  %567 = vmatpush.msrb.mxu3 %v566_v5  ;;  %v600_v5 = vand.u32 4294901760, %v2399_v18 }
  0x41   :  { %408 = vmatpush.msrb.mxu0 %v3376_v35  ;;  %451 = vmatpush.msrb.mxu1 %v2060_v10  ;;  %v583_v14 = vsub.f32 %v2342_v61, %v3377_v9  ;;  %v578_v10 = vand.u32 4294901760, %v577_v23  ;;  %v3379_v35 = vand.u32 4294901760, %v2157_v58  ;;  %v2423_v23 = vsub.f32 %v80_v25, %v2401_v48 }
  0x42   :  { %494 = vmatpush.msrb.mxu2 %v2276_v27  ;;  %573 = vmatpush.msrb.mxu3 %v572_v45  ;;  %v3380_v58 = vand.u32 4294901760, %v2169_v1  ;;  %v173_v9 = vsub.f32 %v2386_v4, %v172_v3  ;;  %v3381_v45 = vand.u32 4294901760, %v2183_v26 }
  0x43   :  { %412 = vmatpush.msrb.mxu0 %v3378_v46  ;;  %453 = vmatpush.msrb.mxu1 %v2062_v11  ;;  %v584_v52 = vand.u32 4294901760, %v583_v14  ;;  %v595_v11 = vsub.f32 %v2375_v36, %v594_v29  ;;  %v606_v14 = vand.u32 4294901760, %v2412_v41  ;;  %v612_v25 = vand.u32 4294901760, %v2423_v23 }
  0x44   :  { %496 = vmatpush.msrb.mxu2 %v2296_v50  ;;  %579 = vmatpush.msrb.mxu3 %v578_v10  ;;  %v2440_v46 = vand.u32 4294901760, %v131_v19  ;;  %v3382_v10 = vand.u32 4294901760, %v2197_v39 }
  0x45   :  { %416 = vmatpush.msrb.mxu0 %v3379_v35  ;;  %455 = vmatpush.msrb.mxu1 %v2075_v17  ;;  %v590_v17 = vand.u32 4294901760, %v589_v13  ;;  %v596_v1 = vand.u32 4294901760, %v595_v11  ;;  %v607_v26 = vsub.f32 %v2412_v41, %v606_v14  ;;  %v3383_v13 = vand.u32 4294901760, %v2202_v42 }
  0x46   :  { %498 = vmatpush.msrb.mxu2 %v2309_v37  ;;  %585 = vmatpush.msrb.mxu3 %v584_v52  ;;  %v2457_v35 = vsub.f32 %v131_v19, %v2440_v46  ;;  %v3384_v52 = vand.u32 4294901760, %v2227_v12  ;;  %v3386_v12 = vld [vmem:[#allocation12_spill] sm:$0xff] }
  0x47   :  { %420 = vmatpush.msrb.mxu0 %v3380_v58  ;;  %457 = vmatpush.msrb.mxu1 %v2083_v20  ;;  %v601_v20 = vsub.f32 %v2399_v18, %v600_v5  ;;  %v103_v58 = vld [vmem:[#allocation5 + $0x138] sm:$0xff] }
  0x48   :  { %500 = vmatpush.msrb.mxu2 %v2313_v2  ;;  %591 = vmatpush.msrb.mxu3 %v590_v17  ;;  %v513_v11 = vand.u32 4294901760, %v2457_v35 }
  0x49   :  { %424 = vmatpush.msrb.mxu0 %v3381_v45  ;;  %459 = vmatpush.msrb.mxu1 %v2110_v33  ;;  %v174_v33 = vand.u32 4294901760, %v173_v9  ;;  %v602_v39 = vand.u32 4294901760, %v601_v20  ;;  %v102_v45 = vld [vmem:[#allocation5 + $0x130] sm:$0xff] }
  0x4a   :  { %502 = vmatpush.msrb.mxu2 %v2335_v30  ;;  %597 = vmatpush.msrb.mxu3 %v596_v1 }
  0x4b   :  { %428 = vmatpush.msrb.mxu0 %v3382_v10  ;;  %461 = vmatpush.msrb.mxu1 %v2113_v34  ;;  %v613_v34 = vsub.f32 %v2423_v23, %v612_v25 }
  0x4c   :  { %504 = vmatpush.msrb.mxu2 %v2349_v15  ;;  %175 = vmatmul.f32.vlgmr.msra.gmra.mxu0 %v174_v33  ;;  %v101_v33 = vld [vmem:[#allocation5 + $0x128] sm:$0xff] }
  0x4d   :  { %432 = vmatpush.msrb.mxu0 %v3383_v13  ;;  %463 = vmatpush.msrb.mxu1 %v2129_v44  ;;  %v608_v44 = vand.u32 4294901760, %v607_v26  ;;  %v614_v42 = vand.u32 4294901760, %v613_v34  ;;  %v2625_v13 = vand.u32 4294901760, %v102_v45  ;;  %v100_v34 = vld [vmem:[#allocation5 + $0x120] sm:$0xff] }
  0x4e   :  { %506 = vmatpush.msrb.mxu2 %v2372_v22  ;;  %603 = vmatpush.msrb.mxu3 %v602_v39 }
  0x4f   :  { %436 = vmatpush.msrb.mxu0 %v3384_v52  ;;  %465 = vmatpush.msrb.mxu1 %v2142_v51  ;;  %v3385_v51 = vand.u32 4294901760, %v2205_v43  ;;  %v132_v52 = vperm.slane %v2315_v6, 2 }
  0x50   :  { %508 = vmatpush.msrb.mxu2 %v2388_v0  ;;  %609 = vmatpush.msrb.mxu3 %v608_v44 }
  0x51   :  { %623 = vmatpush.msra.mxu0 %v2205_v43  ;;  %467 = vmatpush.msrb.mxu1 %v2153_v56  ;;  %v514_v56 = vsub.f32 %v2457_v35, %v513_v11  ;;  %v3389_v43 = vand.u32 4294901760, %v2238_v7 }
  0x52   :  { %510 = vmatpush.msrb.mxu2 %v2401_v48  ;;  %615 = vmatpush.msrb.mxu3 %v614_v42  ;;  %v2638_v42 = vand.u32 4294901760, %v101_v33 }
  0x53   :  { %626 = vmatpush.msra.mxu0 %v2217_v54  ;;  %469 = vmatpush.msrb.mxu1 %v2165_v63  ;;  %v3387_v63 = vand.u32 4294901760, %v2217_v54  ;;  %v515_v19 = vand.u32 4294901760, %v514_v56  ;;  %v3390_v54 = vand.u32 4294901760, %v2246_v57 }
  0x54   :  { %330 = vmatmul.f32.vlgmr.msra.gmra.mxu2 %v2386_v4  ;;  %369 = vmatmul.f32.vlgmr.msra.gmra.mxu3 %v172_v3  ;;  %v3388_v4 = vld [vmem:[#allocation13_spill] sm:$0xff] }
  0x55   :  { %629 = vmatpush.msra.mxu0 %v2238_v7  ;;  %717 = vmatpush.msra.mxu2 %v3385_v51  ;;  %v3391_v7 = vand.u32 4294901760, %v2266_v40 }
  0x56   :  { %471 = vmatpush.msrb.mxu1 %v3386_v12  ;;  %784 = vmatpush.msra.mxu3 %v2175_v8  ;;  %v99_v12 = vld [vmem:[#allocation5 + $0x118] sm:$0xff] }
  0x57   :  { %632 = vmatpush.msra.mxu0 %v2246_v57  ;;  %721 = vmatpush.msra.mxu2 %v3387_v63  ;;  %v3392_v57 = vand.u32 4294901760, %v2283_v24  ;;  %v2650_v63 = vand.u32 4294901760, %v100_v34 }
  0x58   :  { %473 = vmatpush.msrb.mxu1 %v3388_v4  ;;  %786 = vmatpush.msra.mxu3 %v2187_v31 }
  0x59   :  { %635 = vmatpush.msra.mxu0 %v2266_v40  ;;  %276 = vmatmul.f32.vlgmr.msra.gmra.mxu1 %v2362_v49  ;;  %v3393_v40 = vand.u32 4294901760, %v2294_v21 }
  0x5a   :  { %725 = vmatpush.msra.mxu2 %v3389_v43  ;;  %676 = vmatpush.msra.mxu1 %v2175_v8  ;;  %v111_v8 = vld [vmem:[#allocation5 + $0x178] sm:$0xff]  ;;  %v2654_v43 = vsub.f32 %v102_v45, %v2625_v13  ;;  %v96_v45 = vld [vmem:[#allocation5 + $0x100] sm:$0xff] }
  0x5b   :  { %638 = vmatpush.msra.mxu0 %v2283_v24  ;;  %788 = vmatpush.msra.mxu3 %v2212_v53  ;;  %v3394_v24 = vand.u32 4294901760, %v2305_v62 }
  0x5c   :  { %729 = vmatpush.msra.mxu2 %v3390_v54  ;;  %678 = vmatpush.msra.mxu1 %v2187_v31  ;;  %v3395_v31 = vand.u32 4294901760, %v2323_v32  ;;  %v98_v54 = vld [vmem:[#allocation5 + $0x110] sm:$0xff] }
  0x5d   :  { %516 = vmatmul.f32.vlgmr.msrb.gmra.mxu2 %v515_v19  ;;  %641 = vmatpush.msra.mxu0 %v2294_v21  ;;  %v107_v21 = vld [vmem:[#allocation5 + $0x158] sm:$0xff] }
  0x5e   :  { %680 = vmatpush.msra.mxu1 %v2212_v53  ;;  %733 = vmatpush.msra.mxu2 %v3391_v7  ;;  %v2526_v53 = vand.u32 4294901760, %v111_v8  ;;  %v2658_v7 = vand.u32 4294901760, %v132_v52 }
  0x5f   :  { %790 = vmatpush.msra.mxu3 %v2219_v55  ;;  %438 = vmatmul.f32.vlgmr.msrb.gmra.mxu0 %v2362_v49 }
  0x60   :  { %617 = vmatmul.f32.vlgmr.msrb.gmra.mxu3 %v2440_v46  ;;  %644 = vmatpush.msra.mxu0 %v2305_v62 }
  0x61   :  { %682 = vmatpush.msra.mxu1 %v2219_v55  ;;  %737 = vmatpush.msra.mxu2 %v3392_v57  ;;  %v3397_v55 = vand.u32 4294901760, %v2342_v61 }
  0x62   :  { %792 = vmatpush.msra.mxu3 %v2240_v38  ;;  %475 = vmatmul.f32.vlgmr.msrb.gmra.mxu1 %v2362_v49  ;;  %v2557_v49 = vand.u32 4294901760, %v107_v21 }
  0x63   :  { %647 = vmatpush.msra.mxu0 %v2323_v32  ;;  %684 = vmatpush.msra.mxu1 %v2240_v38  ;;  %v3396_v38 = vand.u32 4294901760, %v2333_v60 }
  0x64   :  { %741 = vmatpush.msra.mxu2 %v3393_v40  ;;  %794 = vmatpush.msra.mxu3 %v2253_v47  ;;  %v2664_v40 = vand.u32 4294901760, %v99_v12 }
  0x65   :  { %650 = vmatpush.msra.mxu0 %v2333_v60  ;;  %686 = vmatpush.msra.mxu1 %v2253_v47  ;;  %v110_v47 = vld [vmem:[#allocation5 + $0x170] sm:$0xff] }
  0x66   :  { %745 = vmatpush.msra.mxu2 %v3394_v24  ;;  %796 = vmatpush.msra.mxu3 %v2268_v28  ;;  %v2533_v62 = vand.u32 4294901760, %v110_v47 }
  0x67   :  { %653 = vmatpush.msra.mxu0 %v2342_v61  ;;  %688 = vmatpush.msra.mxu1 %v2268_v28  ;;  %v109_v28 = vld [vmem:[#allocation5 + $0x168] sm:$0xff]  ;;  %v106_v61 = vld [vmem:[#allocation5 + $0x150] sm:$0xff] }
  0x68   :  { %749 = vmatpush.msra.mxu2 %v3395_v31  ;;  %798 = vmatpush.msra.mxu3 %v2276_v27  ;;  %v2540_v32 = vand.u32 4294901760, %v109_v28  ;;  %v2553_v60 = vsub.f32 %v110_v47, %v2533_v62 }
  0x69   :  { %656 = vmatpush.msra.mxu0 %v2360_v16  ;;  %690 = vmatpush.msra.mxu1 %v2276_v27  ;;  %v108_v27 = vld [vmem:[#allocation5 + $0x160] sm:$0xff]  ;;  %v2568_v16 = vand.u32 4294901760, %v106_v61 }
  0x6a   :  { %753 = vmatpush.msra.mxu2 %v3396_v38  ;;  %800 = vmatpush.msra.mxu3 %v2296_v50  ;;  %v2676_v38 = vand.u32 4294901760, %v98_v54 }
  0x6b   :  { %659 = vmatpush.msra.mxu0 %v2375_v36  ;;  %692 = vmatpush.msra.mxu1 %v2296_v50  ;;  %v2543_v50 = vsub.f32 %v111_v8, %v2526_v53  ;;  %v2564_v36 = vsub.f32 %v109_v28, %v2540_v32  ;;  %v2668_v8 = vsub.f32 %v101_v33, %v2638_v42  ;;  %v3343_v28 = vand.u32 4294901760, %v2654_v43 }
  0x6c   :  { %757 = vmatpush.msra.mxu2 %v3397_v55  ;;  %802 = vmatpush.msra.mxu3 %v2309_v37  ;;  %v2680_v55 = vsub.f32 %v100_v34, %v2650_v63  ;;  %v126_v34 = vld [vmem:[#allocation5 + $0x1f0] sm:$0xff] }
  0x6d   :  { %662 = vmatpush.msra.mxu0 %v2399_v18  ;;  %694 = vmatpush.msra.mxu1 %v2309_v37  ;;  %v2550_v37 = vand.u32 4294901760, %v108_v27  ;;  %v2580_v18 = vsub.f32 %v107_v21, %v2557_v49  ;;  %v2685_v21 = vsub.f32 %v132_v52, %v2658_v7 }
  0x6e   :  { %761 = vmatpush.msra.mxu2 %v588_v59  ;;  %804 = vmatpush.msra.mxu3 %v2313_v2  ;;  %v105_v59 = vld [vmem:[#allocation5 + $0x148] sm:$0xff]  ;;  %v3341_v33 = vand.u32 4294901760, %v2680_v55 }
  0x6f   :  { %665 = vmatpush.msra.mxu0 %v2412_v41  ;;  %696 = vmatpush.msra.mxu1 %v2313_v2  ;;  %v863_v2 = vand.u32 4294901760, %v2543_v50  ;;  %v2588_v41 = vand.u32 4294901760, %v105_v59 }
  0x70   :  { %765 = vmatpush.msra.mxu2 %v594_v29  ;;  %806 = vmatpush.msra.mxu3 %v2335_v30  ;;  %v2575_v29 = vsub.f32 %v108_v27, %v2550_v37  ;;  %v97_v27 = vld [vmem:[#allocation5 + $0x108] sm:$0xff] }
  0x71   :  { %668 = vmatpush.msra.mxu0 %v2423_v23  ;;  %698 = vmatpush.msra.mxu1 %v2335_v30  ;;  %v869_v30 = vand.u32 4294901760, %v2553_v60  ;;  %v864_v3 = vsub.f32 %v2543_v50, %v863_v2  ;;  %v2615_v10 = vsub.f32 %v105_v59, %v2588_v41 }
  0x72   :  { %769 = vmatpush.msra.mxu2 %v600_v5  ;;  %808 = vmatpush.msra.mxu3 %v2349_v15  ;;  %v875_v5 = vand.u32 4294901760, %v2564_v36  ;;  %v3351_v9 = vand.u32 4294901760, %v2575_v29 }
  0x73   :  { %671 = vmatmul.f32.vlgmr.msra.gmra.mxu0 %v2457_v35  ;;  %700 = vmatpush.msra.mxu1 %v2349_v15  ;;  %v104_v15 = vld [vmem:[#allocation5 + $0x140] sm:$0xff]  ;;  %v870_v23 = vsub.f32 %v2553_v60, %v869_v30  ;;  %v865_v1 = vand.u32 4294901760, %v864_v3  ;;  %v3347_v51 = vand.u32 4294901760, %v2615_v10  ;;  %v2693_v3 = vsub.f32 %v99_v12, %v2664_v40 }
  0x74   :  { %821 = vmatpush.msrb.mxu0 %v2526_v53  ;;  %773 = vmatpush.msra.mxu2 %v606_v14  ;;  %v2601_v17 = vand.u32 4294901760, %v104_v15  ;;  %v3350_v14 = vand.u32 4294901760, %v2580_v18  ;;  %v876_v20 = vsub.f32 %v2564_v36, %v875_v5  ;;  %v882_v26 = vsub.f32 %v2575_v29, %v3351_v9 }
  0x75   :  { %810 = vmatpush.msra.mxu3 %v2372_v22  ;;  %702 = vmatpush.msra.mxu1 %v2372_v22  ;;  %v2594_v22 = vsub.f32 %v106_v61, %v2568_v16  ;;  %v900_v57 = vsub.f32 %v2615_v10, %v3347_v51  ;;  %v3344_v12 = vand.u32 4294901760, %v2693_v3 }
  0x76   :  { %823 = vmatpush.msrb.mxu0 %v2533_v62  ;;  %777 = vmatpush.msra.mxu2 %v612_v25  ;;  %v2612_v25 = vand.u32 4294901760, %v103_v58  ;;  %v2628_v39 = vsub.f32 %v104_v15, %v2601_v17  ;;  %v877_v44 = vand.u32 4294901760, %v876_v20  ;;  %v883_v56 = vand.u32 4294901760, %v882_v26 }
  0x77   :  { %812 = vmatpush.msra.mxu3 %v2388_v0  ;;  %779 = vmatmul.f32.vlgmr.msra.gmra.mxu2 %v2440_v46  ;;  %v901_v61 = vand.u32 4294901760, %v900_v57  ;;  %v3342_v15 = vand.u32 4294901760, %v2668_v8  ;;  %v918_v20 = vsub.f32 %v2654_v43, %v3343_v28  ;;  %v3354_v26 = vand.u32 4294901760, %v2685_v21  ;;  %v123_v28 = vld [vmem:[#allocation5 + $0x1d8] sm:$0xff] }
  0x78   :  { %825 = vmatpush.msrb.mxu0 %v2540_v32  ;;  %964 = vmatpush.msrb.mxu2 %v2543_v50  ;;  %v2642_v35 = vsub.f32 %v103_v58, %v2612_v25  ;;  %v3346_v4 = vand.u32 4294901760, %v2628_v39  ;;  %v127_v58 = vld [vmem:[#allocation5 + $0x1f8] sm:$0xff]  ;;  %v930_v57 = vsub.f32 %v2680_v55, %v3341_v33  ;;  %v2763_v51 = vand.u32 4294901760, %v123_v28 }
  0x79   :  { %704 = vmatpush.msra.mxu1 %v2388_v0  ;;  %814 = vmatpush.msra.mxu3 %v2401_v48  ;;  %v3348_v0 = vand.u32 4294901760, %v2594_v22 }
  0x7a   :  { %816 = vmatmul.f32.vlgmr.msra.gmra.mxu3 %v2440_v46  ;;  %827 = vmatpush.msrb.mxu0 %v2550_v37  ;;  %v871_v46 = vand.u32 4294901760, %v870_v23  ;;  %v3345_v24 = vand.u32 4294901760, %v2642_v35  ;;  %v906_v47 = vsub.f32 %v2628_v39, %v3346_v4  ;;  %v2697_v23 = vand.u32 4294901760, %v97_v27 }
  0x7b   :  { %967 = vmatpush.msrb.mxu2 %v2553_v60  ;;  %1017 = vmatpush.msrb.mxu3 %v2526_v53 }
  0x7c   :  { %706 = vmatpush.msra.mxu1 %v2401_v48  ;;  %829 = vmatpush.msrb.mxu0 %v2557_v49  ;;  %v888_v48 = vsub.f32 %v2580_v18, %v3350_v14  ;;  %v912_v59 = vsub.f32 %v2642_v35, %v3345_v24 }
  0x7d   :  { %710 = vmatmul.f32.vlgmr.msra.gmra.mxu1 %v513_v11  ;;  %970 = vmatpush.msrb.mxu2 %v2564_v36  ;;  %v894_v11 = vsub.f32 %v2594_v22, %v3348_v0 }
  0x7e   :  { %866 = vmatpush.msrb.mxu1 %v865_v1  ;;  %1019 = vmatpush.msrb.mxu3 %v2533_v62  ;;  %v889_v19 = vand.u32 4294901760, %v888_v48  ;;  %v907_v1 = vand.u32 4294901760, %v906_v47  ;;  %v2710_v48 = vand.u32 4294901760, %v127_v58  ;;  %v913_v52 = vand.u32 4294901760, %v912_v59 }
  0x7f   :  { %831 = vmatpush.msrb.mxu0 %v2568_v16  ;;  %973 = vmatpush.msrb.mxu2 %v2575_v29  ;;  %v895_v31 = vand.u32 4294901760, %v894_v11  ;;  %v2716_v11 = vand.u32 4294901760, %v96_v45  ;;  %v2729_v47 = vand.u32 4294901760, %v126_v34 }
  0x80   :  { %872 = vmatpush.msrb.mxu1 %v871_v46  ;;  %1021 = vmatpush.msrb.mxu3 %v2540_v32  ;;  %v2705_v46 = vsub.f32 %v98_v54, %v2676_v38  ;;  %v919_v54 = vand.u32 4294901760, %v918_v20  ;;  %v2737_v59 = vsub.f32 %v127_v58, %v2710_v48  ;;  %v936_v20 = vsub.f32 %v2693_v3, %v3344_v12 }
  0x81   :  { %833 = vmatpush.msrb.mxu0 %v2588_v41  ;;  %976 = vmatpush.msrb.mxu2 %v2580_v18  ;;  %3398 = vst [vmem:[#allocation12_spill] sm:$0xff] %v2716_v11  ;;  %v2744_v33 = vsub.f32 %v96_v45, %v2716_v11  ;;  %v2758_v12 = vsub.f32 %v126_v34, %v2729_v47 }
  0x82   :  { %878 = vmatpush.msrb.mxu1 %v877_v44  ;;  %1023 = vmatpush.msrb.mxu3 %v2550_v37  ;;  %v924_v44 = vsub.f32 %v2668_v8, %v3342_v15  ;;  %v3353_v4 = vand.u32 4294901760, %v2737_v59 }
  0x83   :  { %835 = vmatpush.msrb.mxu0 %v2601_v17  ;;  %979 = vmatpush.msrb.mxu2 %v2594_v22  ;;  %v3355_v0 = vand.u32 4294901760, %v2744_v33  ;;  %v3356_v14 = vand.u32 4294901760, %v2758_v12 }
  0x84   :  { %884 = vmatpush.msrb.mxu1 %v883_v56  ;;  %1025 = vmatpush.msrb.mxu3 %v2557_v49  ;;  %v2722_v56 = vsub.f32 %v97_v27, %v2697_v23  ;;  %v855_v27 = vsub.f32 %v2685_v21, %v3354_v26  ;;  %v1205_v9 = vsub.f32 %v2737_v59, %v3353_v4  ;;  %v119_v26 = vld [vmem:[#allocation5 + $0x1b8] sm:$0xff] }
  0x85   :  { %837 = vmatpush.msrb.mxu0 %v2612_v25  ;;  %982 = vmatpush.msrb.mxu2 %v2615_v10  ;;  %v1211_v50 = vsub.f32 %v2758_v12, %v3356_v14  ;;  %v3400_v14 = vand.u32 4294901760, %v2685_v21 }
  0x86   :  { %890 = vmatpush.msrb.mxu1 %v889_v19  ;;  %1027 = vmatpush.msrb.mxu3 %v2568_v16  ;;  %v125_v19 = vld [vmem:[#allocation5 + $0x1e8] sm:$0xff]  ;;  %v3352_v58 = vand.u32 4294901760, %v2722_v56  ;;  %v856_v24 = vand.u32 4294901760, %v855_v27 }
  0x87   :  { %839 = vmatpush.msrb.mxu0 %v2625_v13  ;;  %985 = vmatpush.msrb.mxu2 %v2628_v39  ;;  %v2746_v15 = vand.u32 4294901760, %v125_v19 }
  0x88   :  { %896 = vmatpush.msrb.mxu1 %v895_v31  ;;  %1029 = vmatpush.msrb.mxu3 %v2588_v41  ;;  %v3349_v31 = vand.u32 4294901760, %v2705_v46  ;;  %v948_v34 = vsub.f32 %v2722_v56, %v3352_v58  ;;  %v2787_v58 = vsub.f32 %v123_v28, %v2763_v51  ;;  %v118_v28 = vld [vmem:[#allocation5 + $0x1b0] sm:$0xff] }
  0x89   :  { %841 = vmatpush.msrb.mxu0 %v2638_v42  ;;  %988 = vmatpush.msrb.mxu2 %v2642_v35 }
  0x8a   :  { %902 = vmatpush.msrb.mxu1 %v901_v61  ;;  %1031 = vmatpush.msrb.mxu3 %v2601_v17  ;;  %v124_v61 = vld [vmem:[#allocation5 + $0x1e0] sm:$0xff]  ;;  %v942_v45 = vsub.f32 %v2705_v46, %v3349_v31  ;;  %v2768_v31 = vsub.f32 %v125_v19, %v2746_v15  ;;  %v949_v4 = vand.u32 4294901760, %v948_v34  ;;  %v1206_v34 = vand.u32 4294901760, %v1205_v9 }
  0x8b   :  { %843 = vmatpush.msrb.mxu0 %v2650_v63  ;;  %991 = vmatpush.msrb.mxu2 %v2654_v43 }
  0x8c   :  { %908 = vmatpush.msrb.mxu1 %v907_v1  ;;  %1033 = vmatpush.msrb.mxu3 %v2612_v25  ;;  %v925_v1 = vand.u32 4294901760, %v924_v44  ;;  %v931_v44 = vand.u32 4294901760, %v930_v57  ;;  %v937_v57 = vand.u32 4294901760, %v936_v20  ;;  %v943_v20 = vand.u32 4294901760, %v942_v45 }
  0x8d   :  { %845 = vmatpush.msrb.mxu0 %v2664_v40  ;;  %994 = vmatpush.msrb.mxu2 %v2668_v8 }
  0x8e   :  { %914 = vmatpush.msrb.mxu1 %v913_v52  ;;  %1035 = vmatpush.msrb.mxu3 %v2625_v13  ;;  %v2751_v52 = vand.u32 4294901760, %v124_v61 }
  0x8f   :  { %847 = vmatpush.msrb.mxu0 %v2676_v38  ;;  %997 = vmatpush.msrb.mxu2 %v2680_v55 }
  0x90   :  { %920 = vmatpush.msrb.mxu1 %v919_v54  ;;  %1037 = vmatpush.msrb.mxu3 %v2638_v42  ;;  %v122_v54 = vld [vmem:[#allocation5 + $0x1d0] sm:$0xff]  ;;  %v2776_v27 = vsub.f32 %v124_v61, %v2751_v52  ;;  %v120_v61 = vld [vmem:[#allocation5 + $0x1c0] sm:$0xff] }
  0x91   :  { %849 = vmatpush.msrb.mxu0 %v2697_v23  ;;  %1000 = vmatpush.msrb.mxu2 %v2693_v3  ;;  %v2780_v19 = vand.u32 4294901760, %v122_v54 }
  0x92   :  { %926 = vmatpush.msrb.mxu1 %v925_v1  ;;  %1039 = vmatpush.msrb.mxu3 %v2650_v63  ;;  %v121_v1 = vld [vmem:[#allocation5 + $0x1c8] sm:$0xff]  ;;  %v3399_v9 = vand.u32 4294901760, %v2776_v27 }
  0x93   :  { %851 = vmatpush.msrb.mxu0 %v2716_v11  ;;  %1003 = vmatpush.msrb.mxu2 %v2705_v46  ;;  %v2795_v45 = vand.u32 4294901760, %v121_v1 }
  0x94   :  { %932 = vmatpush.msrb.mxu1 %v931_v44  ;;  %1041 = vmatpush.msrb.mxu3 %v2664_v40  ;;  %v954_v44 = vsub.f32 %v2744_v33, %v3355_v0  ;;  %v1223_v36 = vsub.f32 %v2776_v27, %v3399_v9  ;;  %v3402_v9 = vand.u32 4294901760, %v2787_v58 }
  0x95   :  { %857 = vmatmul.f32.vlgmr.msrb.gmra.mxu0 %v856_v24  ;;  %1006 = vmatpush.msrb.mxu2 %v2722_v56  ;;  %v3357_v24 = vand.u32 4294901760, %v2768_v31 }
  0x96   :  { %1058 = vmatpush.msra.mxu0 %v863_v2  ;;  %938 = vmatpush.msrb.mxu1 %v937_v57  ;;  %v2806_v2 = vsub.f32 %v122_v54, %v2780_v19  ;;  %v2808_v57 = vand.u32 4294901760, %v120_v61  ;;  %v955_v60 = vand.u32 4294901760, %v954_v44  ;;  %v2820_v54 = vsub.f32 %v121_v1, %v2795_v45  ;;  %v115_v1 = vld [vmem:[#allocation5 + $0x198] sm:$0xff] }
  0x97   :  { %1043 = vmatpush.msrb.mxu3 %v2676_v38  ;;  %1009 = vmatpush.msrb.mxu2 %v2744_v33  ;;  %v3401_v44 = vand.u32 4294901760, %v2575_v29  ;;  %v3403_v29 = vand.u32 4294901760, %v2580_v18 }
  0x98   :  { %1062 = vmatpush.msra.mxu0 %v869_v30  ;;  %944 = vmatpush.msrb.mxu1 %v943_v20  ;;  %v1217_v30 = vsub.f32 %v2768_v31, %v3357_v24  ;;  %v2822_v20 = vand.u32 4294901760, %v119_v26  ;;  %v1212_v24 = vand.u32 4294901760, %v1211_v50  ;;  %v2834_v0 = vsub.f32 %v120_v61, %v2808_v57 }
  0x99   :  { %1045 = vmatpush.msrb.mxu3 %v2697_v23  ;;  %1012 = vmatmul.f32.vlgmr.msrb.gmra.mxu2 %v2685_v21  ;;  %v116_v21 = vld [vmem:[#allocation5 + $0x1a0] sm:$0xff]  ;;  %v3359_v50 = vand.u32 4294901760, %v2820_v54  ;;  %v3404_v18 = vand.u32 4294901760, %v2806_v2 }
  0x9a   :  { %1066 = vmatpush.msra.mxu0 %v875_v5  ;;  %1162 = vmatpush.msra.mxu2 %v2710_v48  ;;  %v117_v5 = vld [vmem:[#allocation5 + $0x1a8] sm:$0xff]  ;;  %v2846_v61 = vsub.f32 %v119_v26, %v2822_v20 }
  0x9b   :  { %950 = vmatpush.msrb.mxu1 %v949_v4  ;;  %1047 = vmatpush.msrb.mxu3 %v2716_v11  ;;  %v2836_v4 = vand.u32 4294901760, %v118_v28  ;;  %v1229_v11 = vsub.f32 %v2787_v58, %v3402_v9  ;;  %v2860_v9 = vand.u32 4294901760, %v116_v21 }
  0x9c   :  { %1051 = vmatmul.f32.vlgmr.msrb.gmra.mxu3 %v3400_v14  ;;  %1070 = vmatpush.msra.mxu0 %v3401_v44  ;;  %v1218_v14 = vand.u32 4294901760, %v1217_v30  ;;  %v2848_v44 = vand.u32 4294901760, %v117_v5  ;;  %v114_v30 = vld [vmem:[#allocation5 + $0x190] sm:$0xff] }
  0x9d   :  { %1164 = vmatpush.msra.mxu2 %v2729_v47  ;;  %1207 = vmatpush.msra.mxu3 %v1206_v34  ;;  %v1224_v34 = vand.u32 4294901760, %v1223_v36  ;;  %v2858_v26 = vsub.f32 %v118_v28, %v2836_v4  ;;  %v1230_v36 = vand.u32 4294901760, %v1229_v11 }
  0x9e   :  { %956 = vmatpush.msrb.mxu1 %v955_v60  ;;  %1074 = vmatpush.msra.mxu0 %v3403_v29  ;;  %v1235_v60 = vsub.f32 %v2806_v2, %v3404_v18  ;;  %v3405_v29 = vand.u32 4294901760, %v2594_v22  ;;  %v2871_v28 = vsub.f32 %v117_v5, %v2848_v44  ;;  %v2873_v18 = vand.u32 4294901760, %v115_v1 }
  0x9f   :  { %958 = vmatmul.f32.vlgmr.msrb.gmra.mxu1 %v2658_v7  ;;  %1166 = vmatpush.msra.mxu2 %v2746_v15  ;;  %v3406_v22 = vand.u32 4294901760, %v2615_v10  ;;  %v1258_v5 = vand.u32 4294901760, %v2858_v26  ;;  %v3408_v10 = vand.u32 4294901760, %v2628_v39  ;;  %v3410_v39 = vand.u32 4294901760, %v2642_v35 }
  0xa0   :  { %1125 = vmatpush.msra.mxu1 %v2526_v53  ;;  %1213 = vmatpush.msra.mxu3 %v1212_v24  ;;  %v1241_v53 = vsub.f32 %v2820_v54, %v3359_v50  ;;  %v1236_v11 = vand.u32 4294901760, %v1235_v60  ;;  %v2885_v50 = vsub.f32 %v116_v21, %v2860_v9  ;;  %v113_v24 = vld [vmem:[#allocation5 + $0x188] sm:$0xff]  ;;  %v2898_v21 = vsub.f32 %v115_v1, %v2873_v18 }
  0xa1   :  { %1078 = vmatpush.msra.mxu0 %v3405_v29  ;;  %1168 = vmatpush.msra.mxu2 %v2751_v52 }
  0xa2   :  { %1127 = vmatpush.msra.mxu1 %v2533_v62  ;;  %1219 = vmatpush.msra.mxu3 %v1218_v14  ;;  %v133_v62 = vperm.slane %v2315_v6, 3  ;;  %v3407_v14 = vand.u32 4294901760, %v2834_v0  ;;  %v2890_v6 = vand.u32 4294901760, %v114_v30  ;;  %v1270_v1 = vand.u32 4294901760, %v2885_v50 }
  0xa3   :  { %1082 = vmatpush.msra.mxu0 %v3406_v22  ;;  %1170 = vmatpush.msra.mxu2 %v2763_v51  ;;  %v1264_v22 = vand.u32 4294901760, %v2871_v28 }
  0xa4   :  { %1129 = vmatpush.msra.mxu1 %v2540_v32  ;;  %1225 = vmatpush.msra.mxu3 %v1224_v34  ;;  %v1247_v29 = vsub.f32 %v2834_v0, %v3407_v14  ;;  %v1242_v32 = vand.u32 4294901760, %v1241_v53  ;;  %v3409_v34 = vand.u32 4294901760, %v2846_v61  ;;  %v112_v14 = vld [vmem:[#allocation5 + $0x180] sm:$0xff]  ;;  %v1259_v53 = vsub.f32 %v2858_v26, %v1258_v5 }
  0xa5   :  { %1086 = vmatpush.msra.mxu0 %v3408_v10  ;;  %1172 = vmatpush.msra.mxu2 %v2780_v19  ;;  %v2903_v10 = vand.u32 4294901760, %v113_v24  ;;  %v2916_v35 = vsub.f32 %v114_v30, %v2890_v6 }
  0xa6   :  { %1131 = vmatpush.msra.mxu1 %v2550_v37  ;;  %1231 = vmatpush.msra.mxu3 %v1230_v36  ;;  %v1253_v60 = vsub.f32 %v2846_v61, %v3409_v34  ;;  %v2905_v37 = vand.u32 4294901760, %v133_v62  ;;  %v1248_v36 = vand.u32 4294901760, %v1247_v29  ;;  %v3411_v34 = vand.u32 4294901760, %v2654_v43 }
  0xa7   :  { %1090 = vmatpush.msra.mxu0 %v3410_v39  ;;  %1174 = vmatpush.msra.mxu2 %v2795_v45  ;;  %v2918_v39 = vand.u32 4294901760, %v112_v14  ;;  %v1276_v29 = vand.u32 4294901760, %v2898_v21  ;;  %v3412_v43 = vand.u32 4294901760, %v2668_v8  ;;  %v2929_v30 = vsub.f32 %v113_v24, %v2903_v10 }
  0xa8   :  { %1133 = vmatpush.msra.mxu1 %v2557_v49  ;;  %1237 = vmatpush.msra.mxu3 %v1236_v11  ;;  %v1254_v49 = vand.u32 4294901760, %v1253_v60  ;;  %v1265_v11 = vsub.f32 %v2871_v28, %v1264_v22  ;;  %v3413_v60 = vand.u32 4294901760, %v2680_v55  ;;  %v1282_v8 = vand.u32 4294901760, %v2916_v35 }
  0xa9   :  { %1094 = vmatpush.msra.mxu0 %v3411_v34  ;;  %1176 = vmatpush.msra.mxu2 %v2808_v57  ;;  %v2932_v34 = vsub.f32 %v133_v62, %v2905_v37  ;;  %v2943_v24 = vsub.f32 %v112_v14, %v2918_v39  ;;  %v1277_v62 = vsub.f32 %v2898_v21, %v1276_v29  ;;  %v1288_v55 = vand.u32 4294901760, %v2929_v30 }
  0xaa   :  { %1135 = vmatpush.msra.mxu1 %v2568_v16  ;;  %1243 = vmatpush.msra.mxu3 %v1242_v32  ;;  %v1260_v16 = vand.u32 4294901760, %v1259_v53  ;;  %v1271_v32 = vsub.f32 %v2885_v50, %v1270_v1 }
  0xab   :  { %1098 = vmatpush.msra.mxu0 %v3412_v43  ;;  %1178 = vmatpush.msra.mxu2 %v2822_v20  ;;  %v1195_v53 = vand.u32 4294901760, %v2932_v34  ;;  %v3416_v43 = vand.u32 4294901760, %v2722_v56 }
  0xac   :  { %1137 = vmatpush.msra.mxu1 %v2588_v41  ;;  %1249 = vmatpush.msra.mxu3 %v1248_v36  ;;  %v1266_v41 = vand.u32 4294901760, %v1265_v11  ;;  %v3414_v36 = vand.u32 4294901760, %v2693_v3  ;;  %v1272_v14 = vand.u32 4294901760, %v1271_v32  ;;  %v1283_v3 = vsub.f32 %v2916_v35, %v1282_v8 }
  0xad   :  { %1102 = vmatpush.msra.mxu0 %v3413_v60  ;;  %1180 = vmatpush.msra.mxu2 %v2836_v4  ;;  %v1278_v11 = vand.u32 4294901760, %v1277_v62  ;;  %v1522_v60 = vld [vmem:[#allocation7 + $0x68] sm:$0xff]  ;;  %v1521_v62 = vld [vmem:[#allocation7 + $0x60] sm:$0xff] }
  0xae   :  { %1139 = vmatpush.msra.mxu1 %v2601_v17  ;;  %1255 = vmatpush.msra.mxu3 %v1254_v49  ;;  %v3415_v17 = vand.u32 4294901760, %v2705_v46  ;;  %v1294_v49 = vand.u32 4294901760, %v2943_v24  ;;  %v1196_v46 = vsub.f32 %v2932_v34, %v1195_v53  ;;  %v1284_v56 = vand.u32 4294901760, %v1283_v3 }
  0xaf   :  { %1106 = vmatpush.msra.mxu0 %v3414_v36  ;;  %1182 = vmatpush.msra.mxu2 %v2848_v44  ;;  %v1520_v36 = vld [vmem:[#allocation7 + $0x58] sm:$0xff] }
  0xb0   :  { %1141 = vmatpush.msra.mxu1 %v2612_v25  ;;  %1261 = vmatpush.msra.mxu3 %v1260_v16  ;;  %v1289_v25 = vsub.f32 %v2929_v30, %v1288_v55  ;;  %v1295_v16 = vsub.f32 %v2943_v24, %v1294_v49 }
  0xb1   :  { %1110 = vmatpush.msra.mxu0 %v3415_v17  ;;  %1184 = vmatpush.msra.mxu2 %v2860_v9  ;;  %v3085_v17 = vand.u32 4294901760, %v1520_v36 }
  0xb2   :  { %1143 = vmatpush.msra.mxu1 %v2625_v13  ;;  %1267 = vmatpush.msra.mxu3 %v1266_v41  ;;  %v3417_v13 = vand.u32 4294901760, %v2744_v33  ;;  %v1290_v32 = vand.u32 4294901760, %v1289_v25  ;;  %v1296_v33 = vand.u32 4294901760, %v1295_v16  ;;  %v3081_v41 = vand.u32 4294901760, %v1522_v60 }
  0xb3   :  { %1114 = vmatpush.msra.mxu0 %v3416_v43  ;;  %1186 = vmatpush.msra.mxu2 %v2873_v18  ;;  %v3106_v16 = vsub.f32 %v1520_v36, %v3085_v17 }
  0xb4   :  { %1145 = vmatpush.msra.mxu1 %v2638_v42  ;;  %1273 = vmatpush.msra.mxu3 %v1272_v14  ;;  %v1197_v42 = vand.u32 4294901760, %v1196_v46  ;;  %v3083_v14 = vand.u32 4294901760, %v1521_v62  ;;  %v3096_v46 = vsub.f32 %v1522_v60, %v3081_v41 }
  0xb5   :  { %1118 = vmatpush.msra.mxu0 %v3417_v13  ;;  %1188 = vmatpush.msra.mxu2 %v2890_v6 }
  0xb6   :  { %1147 = vmatpush.msra.mxu1 %v2650_v63  ;;  %1279 = vmatpush.msra.mxu3 %v1278_v11  ;;  %v3418_v63 = vand.u32 4294901760, %v2737_v59  ;;  %v1517_v11 = vld [vmem:[#allocation7 + $0x40] sm:$0xff] }
  0xb7   :  { %1120 = vmatmul.f32.vlgmr.msra.gmra.mxu0 %v2658_v7  ;;  %1190 = vmatpush.msra.mxu2 %v2903_v10 }
  0xb8   :  { %1305 = vmatpush.msrb.mxu0 %v2737_v59  ;;  %1149 = vmatpush.msra.mxu1 %v2664_v40  ;;  %v3419_v40 = vand.u32 4294901760, %v2758_v12  ;;  %v3421_v59 = vand.u32 4294901760, %v2768_v31 }
  0xb9   :  { %1285 = vmatpush.msra.mxu3 %v1284_v56  ;;  %1192 = vmatpush.msra.mxu2 %v2918_v39  ;;  %v3103_v56 = vsub.f32 %v1521_v62, %v3083_v14  ;;  %v1510_v62 = vld [vmem:[#allocation7 + $0x8] sm:$0xff] }
  0xba   :  { %1308 = vmatpush.msrb.mxu0 %v2758_v12  ;;  %1151 = vmatpush.msra.mxu1 %v2676_v38  ;;  %v3420_v38 = vld [vmem:[#allocation12_spill] sm:$0xff]  ;;  %v3425_v12 = vand.u32 4294901760, %v2820_v54 }
  0xbb   :  { %1291 = vmatpush.msra.mxu3 %v1290_v32  ;;  %1198 = vmatmul.f32.vlgmr.msra.gmra.mxu2 %v1197_v42  ;;  %v3111_v42 = vand.u32 4294901760, %v1517_v11 }
  0xbc   :  { %1311 = vmatpush.msrb.mxu0 %v2768_v31  ;;  %1399 = vmatpush.msrb.mxu2 %v3418_v63  ;;  %v3427_v31 = vand.u32 4294901760, %v2846_v61 }
  0xbd   :  { %1153 = vmatpush.msra.mxu1 %v2697_v23  ;;  %1297 = vmatpush.msra.mxu3 %v1296_v33  ;;  %v3422_v23 = vand.u32 4294901760, %v2776_v27 }
  0xbe   :  { %1299 = vmatmul.f32.vlgmr.msra.gmra.mxu3 %v2905_v37  ;;  %1314 = vmatpush.msrb.mxu0 %v2776_v27 }
  0xbf   :  { %1403 = vmatpush.msrb.mxu2 %v3419_v40  ;;  %1466 = vmatpush.msrb.mxu3 %v2710_v48 }
  0xc0   :  { %1155 = vmatpush.msra.mxu1 %v3420_v38  ;;  %1317 = vmatpush.msrb.mxu0 %v2787_v58  ;;  %v1580_v38 = vand.u32 4294901760, %v3096_v46 }
  0xc1   :  { %1157 = vmatmul.f32.vlgmr.msra.gmra.mxu1 %v2658_v7  ;;  %1407 = vmatpush.msrb.mxu2 %v3421_v59  ;;  %v3423_v7 = vand.u32 4294901760, %v2787_v58  ;;  %v1586_v59 = vand.u32 4294901760, %v3103_v56 }
  0xc2   :  { %1358 = vmatpush.msrb.mxu1 %v2710_v48  ;;  %1468 = vmatpush.msrb.mxu3 %v2729_v47  ;;  %v3424_v48 = vand.u32 4294901760, %v2806_v2 }
  0xc3   :  { %1320 = vmatpush.msrb.mxu0 %v2806_v2  ;;  %1411 = vmatpush.msrb.mxu2 %v3422_v23  ;;  %v1592_v23 = vand.u32 4294901760, %v3106_v16 }
  0xc4   :  { %1360 = vmatpush.msrb.mxu1 %v2729_v47  ;;  %1470 = vmatpush.msrb.mxu3 %v2746_v15 }
  0xc5   :  { %1323 = vmatpush.msrb.mxu0 %v2820_v54  ;;  %1415 = vmatpush.msrb.mxu2 %v3423_v7 }
  0xc6   :  { %1362 = vmatpush.msrb.mxu1 %v2746_v15  ;;  %1472 = vmatpush.msrb.mxu3 %v2751_v52  ;;  %v3426_v15 = vand.u32 4294901760, %v2834_v0 }
  0xc7   :  { %1326 = vmatpush.msrb.mxu0 %v2834_v0  ;;  %1419 = vmatpush.msrb.mxu2 %v3424_v48  ;;  %v128_v0 = vld [vmem:[%s3318_s2] sm:$0x1]  ;;  %s2017_s2 = smov [#allocation8]  }
  0xc8   :  { %1364 = vmatpush.msrb.mxu1 %v2751_v52  ;;  %1474 = vmatpush.msrb.mxu3 %v2763_v51  ;;  %s1887_s5 = sshll.u32 %s2017_s2, 4  ;;  %s1888_s5 = int_to_ptr.vmem [resolvable:$true] %s1887_s5 }
  0xc9   :  { %1329 = vmatpush.msrb.mxu0 %v2846_v61  ;;  %1423 = vmatpush.msrb.mxu2 %v3425_v12 }
  0xca   :  { %1366 = vmatpush.msrb.mxu1 %v2763_v51  ;;  %1476 = vmatpush.msrb.mxu3 %v2780_v19  ;;  %v176_v51 = vpop.f32.mrf.mxu0 }
  0xcb   :  { %1332 = vmatpush.msrb.mxu0 %v2858_v26  ;;  %1427 = vmatpush.msrb.mxu2 %v3426_v15  ;;  %v177_v47 = vadd.f32 %v176_v51, %v128_v0 }
  0xcc   :  { %1368 = vmatpush.msrb.mxu1 %v2780_v19  ;;  %1478 = vmatpush.msrb.mxu3 %v2795_v45 }
  0xcd   :  { %1335 = vmatpush.msrb.mxu0 %v2871_v28  ;;  %1431 = vmatpush.msrb.mxu2 %v3427_v31  ;;  %v1581_v31 = vsub.f32 %v3096_v46, %v1580_v38 }
  0xce   :  { %1370 = vmatpush.msrb.mxu1 %v2795_v45  ;;  %1480 = vmatpush.msrb.mxu3 %v2808_v57 }
  0xcf   :  { %1338 = vmatpush.msrb.mxu0 %v2885_v50  ;;  %1435 = vmatpush.msrb.mxu2 %v1258_v5 }
  0xd0   :  { %1372 = vmatpush.msrb.mxu1 %v2808_v57  ;;  %1482 = vmatpush.msrb.mxu3 %v2822_v20 }
  0xd1   :  { %1341 = vmatpush.msrb.mxu0 %v2898_v21  ;;  %1439 = vmatpush.msrb.mxu2 %v1264_v22 }
  0xd2   :  { %1374 = vmatpush.msrb.mxu1 %v2822_v20  ;;  %1484 = vmatpush.msrb.mxu3 %v2836_v4 }
  0xd3   :  { %1344 = vmatpush.msrb.mxu0 %v2916_v35  ;;  %1443 = vmatpush.msrb.mxu2 %v1270_v1 }
  0xd4   :  { %1376 = vmatpush.msrb.mxu1 %v2836_v4  ;;  %1486 = vmatpush.msrb.mxu3 %v2848_v44 }
  0xd5   :  { %1347 = vmatpush.msrb.mxu0 %v2929_v30  ;;  %1447 = vmatpush.msrb.mxu2 %v1276_v29  ;;  %v1524_v30 = vld [vmem:[#allocation7 + $0x78] sm:$0xff] }
  0xd6   :  { %1378 = vmatpush.msrb.mxu1 %v2848_v44  ;;  %1488 = vmatpush.msrb.mxu3 %v2860_v9  ;;  %v277_v58 = vpop.f32.mrf.mxu1 }
  0xd7   :  { %1350 = vmatpush.msrb.mxu0 %v2943_v24  ;;  %1451 = vmatpush.msrb.mxu2 %v1282_v8  ;;  %v278_v52 = vadd.f32 %v277_v58, %v177_v47  ;;  %v331_v27 = vpop.f32.mrf.mxu2  ;;  %v370_v45 = vpop.f32.mrf.mxu3  ;;  %v3077_v8 = vand.u32 4294901760, %v1524_v30  ;;  %v3137_v47 = vsub.f32 %v1517_v11, %v3111_v42  ;;  %v1516_v58 = vld [vmem:[#allocation7 + $0x38] sm:$0xff] }
  0xd8   :  { %1380 = vmatpush.msrb.mxu1 %v2860_v9  ;;  %1490 = vmatpush.msrb.mxu3 %v2873_v18 }
  0xd9   :  { %1353 = vmatmul.f32.vlgmr.msrb.gmra.mxu0 %v2932_v34  ;;  %1455 = vmatpush.msrb.mxu2 %v1288_v55  ;;  %v332_v19 = vadd.f32 %v331_v27, %v278_v52  ;;  %v1523_v34 = vld [vmem:[#allocation7 + $0x70] sm:$0xff]  ;;  %v3090_v43 = vsub.f32 %v1524_v30, %v3077_v8  ;;  %v1514_v27 = vld [vmem:[#allocation7 + $0x28] sm:$0xff] }
  0xda   :  { %1382 = vmatpush.msrb.mxu1 %v2873_v18  ;;  %1492 = vmatpush.msrb.mxu3 %v2890_v6  ;;  %v3079_v24 = vand.u32 4294901760, %v1523_v34  ;;  %v1519_v55 = vld [vmem:[#allocation7 + $0x50] sm:$0xff] }
  0xdb   :  { %1459 = vmatpush.msrb.mxu2 %v1294_v49  ;;  %v371_v2 = vadd.f32 %v370_v45, %v332_v19  ;;  %v3087_v3 = vand.u32 4294901760, %v1519_v55  ;;  %v1518_v49 = vld [vmem:[#allocation7 + $0x48] sm:$0xff]  ;;  %1526 = vmatpush.msra.mxu0 %v3077_v8  ;;  %v1568_v63 = vand.u32 4294901760, %v3090_v43  ;;  %v1515_v52 = vld [vmem:[#allocation7 + $0x30] sm:$0xff] }
  0xdc   :  { %1384 = vmatpush.msrb.mxu1 %v2890_v6  ;;  %1494 = vmatpush.msrb.mxu3 %v2903_v10  ;;  %v439_v57 = vpop.f32.mrf.mxu0  ;;  %v3093_v25 = vsub.f32 %v1523_v34, %v3079_v24  ;;  %v3099_v13 = vand.u32 4294901760, %v1518_v49 }
  0xdd   :  { %1461 = vmatmul.f32.vlgmr.msrb.gmra.mxu2 %v2905_v37  ;;  %v440_v54 = vadd.f32 %v439_v57, %v371_v2  ;;  %v3109_v32 = vsub.f32 %v1519_v55, %v3087_v3  ;;  %1528 = vmatpush.msra.mxu0 %v3079_v24  ;;  %v1569_v12 = vsub.f32 %v3090_v43, %v1568_v63 }
  0xde   :  { %1386 = vmatpush.msrb.mxu1 %v2903_v10  ;;  %1496 = vmatpush.msrb.mxu3 %v2918_v39  ;;  %v1574_v40 = vand.u32 4294901760, %v3093_v25  ;;  %v3121_v7 = vsub.f32 %v1518_v49, %v3099_v13  ;;  %v1587_v57 = vsub.f32 %v3103_v56, %v1586_v59 }
  0xdf   :  { %1498 = vmatmul.f32.vlgmr.msrb.gmra.mxu3 %v2905_v37  ;;  %v476_v20 = vpop.f32.mrf.mxu1  ;;  %1669 = vmatpush.msra.mxu2 %v3090_v43  ;;  %v1598_v51 = vand.u32 4294901760, %v3109_v32  ;;  %v1570_v45 = vand.u32 4294901760, %v1569_v12  ;;  %v3196_v12 = vand.u32 4294901760, %v1510_v62 }
  0xe0   :  { %1388 = vmatpush.msrb.mxu1 %v2918_v39  ;;  %v477_v4 = vadd.f32 %v476_v20, %v440_v54  ;;  %v517_v50 = vpop.f32.mrf.mxu2  ;;  %1722 = vmatpush.msra.mxu3 %v3077_v8  ;;  %v1575_v15 = vsub.f32 %v3093_v25, %v1574_v40  ;;  %v1593_v20 = vsub.f32 %v3106_v16, %v1592_v23 }
  0xe1   :  { %1392 = vmatmul.f32.vlgmr.msrb.gmra.mxu1 %v1195_v53  ;;  %1530 = vmatpush.msra.mxu0 %v3081_v41 }
  0xe2   :  { %v518_v61 = vadd.f32 %v517_v50, %v477_v4  ;;  %1724 = vmatpush.msra.mxu3 %v3079_v24  ;;  %1672 = vmatpush.msra.mxu2 %v3093_v25  ;;  %v1576_v2 = vand.u32 4294901760, %v1575_v15  ;;  %v1604_v4 = vand.u32 4294901760, %v3121_v7  ;;  %v1513_v50 = vld [vmem:[#allocation7 + $0x20] sm:$0xff] }
  0xe3   :  { %v618_v44 = vpop.f32.mrf.mxu3  ;;  %1532 = vmatpush.msra.mxu0 %v3083_v14  ;;  %1571 = vmatpush.msra.mxu1 %v1570_v45  ;;  %v1509_v15 = vld [vmem:[#allocation7] sm:$0xff] }
  0xe4   :  { %v619_v9 = vadd.f32 %v618_v44, %v518_v61  ;;  %1726 = vmatpush.msra.mxu3 %v3081_v41  ;;  %1675 = vmatpush.msra.mxu2 %v3096_v46  ;;  %v1582_v61 = vand.u32 4294901760, %v1581_v31  ;;  %v3151_v44 = vand.u32 4294901760, %v1516_v58 }
  0xe5   :  { %1534 = vmatpush.msra.mxu0 %v3085_v17  ;;  %1577 = vmatpush.msra.mxu1 %v1576_v2 }
  0xe6   :  { %1728 = vmatpush.msra.mxu3 %v3083_v14  ;;  %1678 = vmatpush.msra.mxu2 %v3103_v56 }
  0xe7   :  { %1536 = vmatpush.msra.mxu0 %v3087_v3  ;;  %1583 = vmatpush.msra.mxu1 %v1582_v61 }
  0xe8   :  { %1730 = vmatpush.msra.mxu3 %v3085_v17  ;;  %1681 = vmatpush.msra.mxu2 %v3106_v16 }
  0xe9   :  { %1538 = vmatpush.msra.mxu0 %v3099_v13 }
  0xea   :  { %1732 = vmatpush.msra.mxu3 %v3087_v3  ;;  %1684 = vmatpush.msra.mxu2 %v3109_v32 }
  0xeb   :  { %1540 = vmatpush.msra.mxu0 %v3111_v42 }
  0xec   :  { %1734 = vmatpush.msra.mxu3 %v3099_v13  ;;  %1687 = vmatpush.msra.mxu2 %v3121_v7 }
  0xed   :  { %1542 = vmatpush.msra.mxu0 %v3151_v44 }
  0xee   :  { %1736 = vmatpush.msra.mxu3 %v3111_v42  ;;  %1690 = vmatpush.msra.mxu2 %v3137_v47 }
  0xf0   :  { %v672_v26 = vpop.f32.mrf.mxu0  ;;  %1738 = vmatpush.msra.mxu3 %v3151_v44 }
  0xf1   :  { %v673_v18 = vadd.f32 %v672_v26, %v619_v9  ;;  %v3153_v26 = vand.u32 4294901760, %v1515_v52  ;;  %v3155_v9 = vand.u32 4294901760, %v1514_v27 }
  0xf3   :  { %v3180_v34 = vsub.f32 %v1514_v27, %v3155_v9  ;;  %1544 = vmatpush.msra.mxu0 %v3153_v26  ;;  %1740 = vmatpush.msra.mxu3 %v3153_v26 }
  0xf5   :  { %1546 = vmatpush.msra.mxu0 %v3155_v9  ;;  %1742 = vmatpush.msra.mxu3 %v3155_v9 }
  0xfa   :  { %v711_v28 = vpop.f32.mrf.mxu1  ;;  %v780_v6 = vpop.f32.mrf.mxu2 }
  0xfb   :  { %v712_v5 = vadd.f32 %v711_v28, %v673_v18  ;;  %v1599_v18 = vsub.f32 %v3109_v32, %v1598_v51 }
  0xfd   :  { %v781_v22 = vadd.f32 %v780_v6, %v712_v5  ;;  %v817_v21 = vpop.f32.mrf.mxu3  ;;  %v1610_v5 = vand.u32 4294901760, %v3137_v47  ;;  %v1512_v6 = vld [vmem:[#allocation7 + $0x18] sm:$0xff]  ;;  %v1600_v49 = vand.u32 4294901760, %v1599_v18 }
  0xfe   :  { %v3182_v60 = vand.u32 4294901760, %v1512_v6 }
  0xff   :  { %v818_v37 = vadd.f32 %v817_v21, %v781_v22  ;;  %v1588_v21 = vand.u32 4294901760, %v1587_v57  ;;  %v1611_v11 = vsub.f32 %v3137_v47, %v1610_v5 }
 0x101   :  { %1589 = vmatpush.msra.mxu1 %v1588_v21  ;;  %v1612_v2 = vand.u32 4294901760, %v1611_v11 }
 0x112   :  { %v858_v10 = vpop.f32.mrf.mxu0 }
 0x113   :  { %v859_v35 = vadd.f32 %v858_v10, %v818_v37  ;;  %v3164_v10 = vsub.f32 %v1516_v58, %v3151_v44  ;;  %v3168_v37 = vsub.f32 %v1515_v52, %v3153_v26  ;;  %v1628_v58 = vand.u32 4294901760, %v3180_v34 }
 0x114   :  { %v3204_v52 = vsub.f32 %v1512_v6, %v3182_v60 }
 0x115   :  { %v1616_v30 = vand.u32 4294901760, %v3164_v10  ;;  %1693 = vmatpush.msra.mxu2 %v3164_v10  ;;  %v1629_v18 = vsub.f32 %v3180_v34, %v1628_v58 }
 0x116   :  { %v1640_v6 = vand.u32 4294901760, %v3204_v52 }
 0x117   :  { %1696 = vmatpush.msra.mxu2 %v3168_v37 }
 0x118   :  { %v1641_v11 = vsub.f32 %v3204_v52, %v1640_v6 }
 0x119   :  { %1699 = vmatpush.msra.mxu2 %v3180_v34 }
 0x11c   :  { %v959_v1 = vpop.f32.mrf.mxu1  ;;  %v1013_v29 = vpop.f32.mrf.mxu2 }
 0x11d   :  { %v960_v39 = vadd.f32 %v959_v1, %v859_v35  ;;  %v3170_v1 = vand.u32 4294901760, %v1513_v50  ;;  %v1511_v35 = vld [vmem:[#allocation7 + $0x10] sm:$0xff] }
 0x11e   :  { %v3184_v55 = vand.u32 4294901760, %v1511_v35 }
 0x11f   :  { %v1014_v53 = vadd.f32 %v1013_v29, %v960_v39  ;;  %v1052_v33 = vpop.f32.mrf.mxu3  ;;  %v1605_v39 = vsub.f32 %v3121_v7, %v1604_v4  ;;  %v1594_v29 = vand.u32 4294901760, %v1593_v20  ;;  %v3216_v20 = vand.u32 4294901760, %v1509_v15  ;;  %1548 = vmatpush.msra.mxu0 %v3170_v1  ;;  %1744 = vmatpush.msra.mxu3 %v3170_v1 }
 0x120   :  { %v3209_v45 = vsub.f32 %v1511_v35, %v3184_v55 }
 0x121   :  { %v1053_v0 = vadd.f32 %v1052_v33, %v1014_v53  ;;  %v1622_v33 = vand.u32 4294901760, %v3168_v37  ;;  %1595 = vmatpush.msra.mxu1 %v1594_v29  ;;  %v1606_v31 = vand.u32 4294901760, %v1605_v39  ;;  %1550 = vmatpush.msra.mxu0 %v3182_v60 }
 0x122   :  { %v1646_v21 = vand.u32 4294901760, %v3209_v45  ;;  %1746 = vmatpush.msra.mxu3 %v3182_v60 }
 0x123   :  { %1601 = vmatpush.msra.mxu1 %v1600_v49  ;;  %v1623_v57 = vsub.f32 %v3168_v37, %v1622_v33  ;;  %v1630_v49 = vand.u32 4294901760, %v1629_v18  ;;  %1552 = vmatpush.msra.mxu0 %v3184_v55 }
 0x124   :  { %1748 = vmatpush.msra.mxu3 %v3184_v55 }
 0x125   :  { %1607 = vmatpush.msra.mxu1 %v1606_v31  ;;  %v1624_v39 = vand.u32 4294901760, %v1623_v57  ;;  %1554 = vmatpush.msra.mxu0 %v3196_v12 }
 0x126   :  { %1750 = vmatpush.msra.mxu3 %v3196_v12 }
 0x127   :  { %1613 = vmatpush.msra.mxu1 %v1612_v2  ;;  %1556 = vmatpush.msra.mxu0 %v3216_v20 }
 0x128   :  { %1752 = vmatpush.msra.mxu3 %v3216_v20 }
 0x129   :  { %1763 = vmatpush.msrb.mxu0 %v1568_v63 }
 0x12b   :  { %1767 = vmatpush.msrb.mxu0 %v1574_v40 }
 0x12d   :  { %1771 = vmatpush.msrb.mxu0 %v1580_v38 }
 0x12f   :  { %1775 = vmatpush.msrb.mxu0 %v1586_v59 }
 0x131   :  { %1779 = vmatpush.msrb.mxu0 %v1592_v23 }
 0x133   :  { %1783 = vmatpush.msrb.mxu0 %v1598_v51 }
 0x134   :  { %v1121_v48 = vpop.f32.mrf.mxu0 }
 0x135   :  { %v1122_v54 = vadd.f32 %v1121_v48, %v1053_v0  ;;  %v3193_v48 = vsub.f32 %v1513_v50, %v3170_v1  ;;  %v1617_v0 = vsub.f32 %v3164_v10, %v1616_v30  ;;  %v3221_v50 = vsub.f32 %v1510_v62, %v3196_v12  ;;  %1787 = vmatpush.msrb.mxu0 %v1604_v4 }
 0x136   :  { %v3236_v62 = vsub.f32 %v1509_v15, %v3216_v20 }
 0x137   :  { %v1652_v31 = vand.u32 4294901760, %v3221_v50  ;;  %1702 = vmatpush.msra.mxu2 %v3193_v48  ;;  %1791 = vmatpush.msrb.mxu0 %v1610_v5 }
 0x138   :  { %v1658_v2 = vand.u32 4294901760, %v3236_v62 }
 0x139   :  { %1705 = vmatpush.msra.mxu2 %v3204_v52  ;;  %1795 = vmatpush.msrb.mxu0 %v1616_v30 }
 0x13b   :  { %1708 = vmatpush.msra.mxu2 %v3209_v45  ;;  %1799 = vmatpush.msrb.mxu0 %v1622_v33 }
 0x13d   :  { %1711 = vmatpush.msra.mxu2 %v3221_v50  ;;  %1803 = vmatpush.msrb.mxu0 %v1628_v58 }
 0x13e   :  { %v1158_v19 = vpop.f32.mrf.mxu1  ;;  %v1199_v22 = vpop.f32.mrf.mxu2 }
 0x13f   :  { %v1159_v28 = vadd.f32 %v1158_v19, %v1122_v54  ;;  %v1634_v54 = vand.u32 4294901760, %v3193_v48  ;;  %1714 = vmatpush.msra.mxu2 %v3236_v62 }
 0x141   :  { %v1200_v36 = vadd.f32 %v1199_v22, %v1159_v28  ;;  %v1300_v53 = vpop.f32.mrf.mxu3  ;;  %v1618_v28 = vand.u32 4294901760, %v1617_v0  ;;  %v1635_v29 = vsub.f32 %v3193_v48, %v1634_v54  ;;  %1807 = vmatpush.msrb.mxu0 %v1634_v54 }
 0x143   :  { %v1301_v27 = vadd.f32 %v1300_v53, %v1200_v36  ;;  %1619 = vmatpush.msra.mxu1 %v1618_v28  ;;  %v1653_v28 = vsub.f32 %v3221_v50, %v1652_v31  ;;  %1811 = vmatpush.msrb.mxu0 %v1640_v6 }
 0x145   :  { %1625 = vmatpush.msra.mxu1 %v1624_v39  ;;  %1815 = vmatpush.msrb.mxu0 %v1646_v21 }
 0x147   :  { %1631 = vmatpush.msra.mxu1 %v1630_v49  ;;  %1819 = vmatpush.msrb.mxu0 %v1652_v31 }
 0x149   :  { %1823 = vmatpush.msrb.mxu0 %v1658_v2 }
 0x156   :  { %v1354_v19 = vpop.f32.mrf.mxu0 }
 0x157   :  { %v1355_v61 = vadd.f32 %v1354_v19, %v1301_v27  ;;  %v1636_v27 = vand.u32 4294901760, %v1635_v29  ;;  %v1647_v19 = vsub.f32 %v3209_v45, %v1646_v21 }
 0x159   :  { %1637 = vmatpush.msra.mxu1 %v1636_v27  ;;  %v1648_v18 = vand.u32 4294901760, %v1647_v19 }
 0x15e   :  { %v1393_v22 = vpop.f32.mrf.mxu1 }
 0x15f   :  { %v1394_v35 = vadd.f32 %v1393_v22, %v1355_v61  ;;  %v1642_v61 = vand.u32 4294901760, %v1641_v11  ;;  %v1659_v22 = vsub.f32 %v3236_v62, %v1658_v2 }
 0x160   :  { %v1462_v36 = vpop.f32.mrf.mxu2 }
 0x161   :  { %v1463_v53 = vadd.f32 %v1462_v36, %v1394_v35  ;;  %1643 = vmatpush.msra.mxu1 %v1642_v61  ;;  %v1654_v35 = vand.u32 4294901760, %v1653_v28  ;;  %v1660_v39 = vand.u32 4294901760, %v1659_v22 }
 0x162   :  { %v1499_v15 = vpop.f32.mrf.mxu3 }
 0x163   :  { %v3248_v0 = vadd.f32 %v1499_v15, %v1463_v53  ;;  %1649 = vmatpush.msra.mxu1 %v1648_v18 }
 0x165   :  { %v1503_v57 = vsel %vm1502_vm0, %v3248_v0, -inf  ;;  %1655 = vmatpush.msra.mxu1 %v1654_v35 }
 0x166   :  { %1504 = vmax.xlane.f32.xlu0 %v1503_v57 }
 0x167   :  { %1661 = vmatpush.msra.mxu1 %v1660_v39 }
 0x169   :  { %1830 = vmatpush.msrb.mxu1 %v3077_v8 }
 0x16b   :  { %1832 = vmatpush.msrb.mxu1 %v3079_v24 }
 0x16d   :  { %1834 = vmatpush.msrb.mxu1 %v3081_v41 }
 0x16f   :  { %1836 = vmatpush.msrb.mxu1 %v3083_v14 }
 0x171   :  { %1838 = vmatpush.msrb.mxu1 %v3085_v17 }
 0x173   :  { %1840 = vmatpush.msrb.mxu1 %v3087_v3 }
 0x175   :  { %1842 = vmatpush.msrb.mxu1 %v3099_v13 }
 0x177   :  { %1844 = vmatpush.msrb.mxu1 %v3111_v42 }
 0x179   :  { %1846 = vmatpush.msrb.mxu1 %v3151_v44 }
 0x17b   :  { %1848 = vmatpush.msrb.mxu1 %v3153_v26 }
 0x17d   :  { %1850 = vmatpush.msrb.mxu1 %v3155_v9 }
 0x17f   :  { %1852 = vmatpush.msrb.mxu1 %v3170_v1 }
 0x181   :  { %1854 = vmatpush.msrb.mxu1 %v3182_v60 }
 0x183   :  { %1856 = vmatpush.msrb.mxu1 %v3184_v55 }
 0x185   :  { %1858 = vmatpush.msrb.mxu1 %v3196_v12 }
 0x187   :  { %1860 = vmatpush.msrb.mxu1 %v3216_v20 }
 0x1d9   :  { %v1505_v8 = vpop.xlane.xlu0 %1504 }
 0x1da   :  { %v1506_v24 = vsub.f32 %v3248_v0, %v1505_v8 }
 0x1dc   :  { %v1507_v41 = vmul.f32 1.442695, %v1506_v24 }
 0x1de   :  { %1906 = vpow2.f32 %v1507_v41 }
 0x1e4   :  { %v1907_v14 = vpop.eup %1906 }
 0x1e5   :  { %v1557_v17 = vand.u32 4294901760, %v1907_v14 }
 0x1e7   :  { %1663 = vmatmul.f32.vlgmr.msra.gmra.mxu1 %v1557_v17  ;;  %v1558_v3 = vsub.f32 %v1907_v14, %v1557_v17 }
 0x1e9   :  { %1717 = vmatmul.f32.vlgmr.msra.gmra.mxu2 %v1558_v3  ;;  %v1559_v43 = vand.u32 4294901760, %v1558_v3 }
 0x1eb   :  { %1756 = vmatmul.f32.vlgmr.msra.gmra.mxu3 %v1559_v43  ;;  %v1560_v25 = vsub.f32 %v1558_v3, %v1559_v43 }
 0x1ed   :  { %v1561_v46 = vand.u32 4294901760, %v1560_v25 }
 0x1ef   :  { %1562 = vmatmul.f32.vlgmr.msra.gmra.mxu0 %v1561_v46  ;;  %1862 = vmatmul.f32.vlgmr.msrb.gmra.mxu1 %v1557_v17 }
 0x1f7   :  { %1825 = vmatmul.f32.vlgmr.msrb.gmra.mxu0 %v1557_v17 }
 0x264   :  { %v1664_v13 = vpop.f32.mrf.mxu1 }
 0x26c   :  { %v1563_v56 = vpop.f32.mrf.mxu0  ;;  %v1718_v32 = vpop.f32.mrf.mxu2 }
 0x26d   :  { %v1665_v16 = vadd.f32 %v1664_v13, %v1563_v56  ;;  %v1863_v23 = vpop.f32.mrf.mxu1 }
 0x26e   :  { %v1757_v63 = vpop.f32.mrf.mxu3 }
 0x26f   :  { %v1719_v42 = vadd.f32 %v1718_v32, %v1665_v16 }
 0x271   :  { %v1758_v40 = vadd.f32 %v1757_v63, %v1719_v42 }
 0x274   :  { %v1826_v38 = vpop.f32.mrf.mxu0 }
 0x275   :  { %v1827_v59 = vadd.f32 %v1826_v38, %v1758_v40 }
 0x277   :  { %v1864_v7 = vadd.f32 %v1863_v23, %v1827_v59 }
 0x279   :  { %1908 = vrcp.f32 %v1864_v7  ;;  %v1877_v44 = vand.u32 2147483648, %v1864_v7  ;;  %v1875_v9 = vand.u32 2147483647, %v1864_v7  ;;  %vm1871_vm2 = vweird.f32 %v1864_v7 }
 0x27b   :  { %v1878_v10 = vor.u32 1.1754944e-38, %v1877_v44  ;;  %vm1876_vm4 = vcmp.eq.f32.partialorder %v1875_v9, 8.507059e+37 }
 0x27f   :  { %v1909_v51 = vpop.eup %1908 }
 0x280   :  { %v1867_v47 = vmul.f32 %v1909_v51, %v1864_v7  ;;  %vm1872_vm1 = vweird.f32 %v1909_v51 }
 0x281   :  { %vm1873_vm3 = vmor %vm1871_vm2, %vm1872_vm1 }
 0x282   :  { %v1868_v4 = vsub.f32 1.0, %v1867_v47 }
 0x284   :  { %v1869_v26 = vmul.f32 %v1909_v51, %v1868_v4 }
 0x286   :  { %v1870_v5 = vadd.f32 %v1909_v51, %v1869_v26 }
 0x288   :  { %v1874_v37 = vsel %vm1873_vm3, %v1909_v51, %v1870_v5 }
 0x289   :  { %v1879_v1 = vsel %vm1876_vm4, %v1878_v10, %v1874_v37 }
 0x28a   :  { %v1880_v30 = vmul.f32 %v1907_v14, %v1879_v1 }
 0x28c   :  { %1881 = vst [vmem:[#allocation8] sm:$0x1] %v1880_v30 }
 0x28d   :  { %1892 = dma.vmem_to_hbm [thread:$0]  %s1888_s5, 16, %s1890_s8, [#allocation4]  }
 0x28e   :  { %2010 = dma.done.wait [#allocation4], 16  }
 0x28f   :  { %2011 = vsyncadd [#allocation4], 4294967280 }
 0x290   :  { %1897 = vsyncpa [#allocation3], 1 }
 0x291   :  { %1898 = vsyncpa [#allocation6], 1 }
 0x292   :  { %1899 = vsyncpa [#allocation4], 1 }

</bundles_post_ra>
